<compile_context>
chip_gen: v7x
topology: tpu7x:2x2x1
jax: 0.10.0
libtpu: 0.0.40
codegen_flags: <defaults>
</compile_context>

<pallas_src>
import functools

import jax
import jax.numpy as jnp
from jax.experimental import pallas as pl
from jax.experimental.pallas import tpu as pltpu

# Logical (PyTorch) dims; hidden/output dims lane-padded to multiples of 128.
D_IN, D_H1, D_H2, D_OUT = 200, 300, 150, 100
P_H1, P_H2, P_OUT = 384, 256, 128


def _mlp_kernel(x_ref, w1_ref, b1_ref, w2_ref, b2_ref, w3_ref, b3_ref, o_ref):
    # bf16 cast done in-kernel (cheap VPU work hidden under the MXU) instead of
    # an extra XLA pad/cast pass over x in HBM.
    x = x_ref[...].astype(jnp.bfloat16)
    # fc1 + relu  (bf16 operands, f32 accumulate, f32 bias/ReLU)
    h1 = jnp.dot(x, w1_ref[...], preferred_element_type=jnp.float32)
    h1 = jnp.maximum(h1 + b1_ref[...], 0.0)
    # fc2 + relu
    h2 = jnp.dot(h1.astype(jnp.bfloat16), w2_ref[...],
                 preferred_element_type=jnp.float32)
    h2 = jnp.maximum(h2 + b2_ref[...], 0.0)
    # fc3 (no activation)
    out = jnp.dot(h2.astype(jnp.bfloat16), w3_ref[...],
                  preferred_element_type=jnp.float32)
    o_ref[...] = (out + b3_ref[...]).astype(o_ref.dtype)


def _round_up(n, m):
    return ((n + m - 1) // m) * m


def _pad2(a, rows, cols):
    return jnp.pad(a, ((0, rows - a.shape[0]), (0, cols - a.shape[1])))


def pad_params(params):
    """Pad/cast weights & biases ONCE (hoisted out of the per-call path).

    Padded rows/cols are exactly zero, so they contribute 0 through every
    matmul, bias add and ReLU. Weights -> bf16 (MXU), biases -> f32 (VPU add).
    Only N dims are padded; w1 keeps its logical K=200 to match the unpadded x.
    """
    return {
        "w1": _pad2(params["w1"], D_IN, P_H1).astype(jnp.bfloat16),
        "w2": _pad2(params["w2"], P_H1, P_H2).astype(jnp.bfloat16),
        "w3": _pad2(params["w3"], P_H2, P_OUT).astype(jnp.bfloat16),
        "b1": _pad2(params["b1"], 1, P_H1).astype(jnp.float32),
        "b2": _pad2(params["b2"], 1, P_H2).astype(jnp.float32),
        "b3": _pad2(params["b3"], 1, P_OUT).astype(jnp.float32),
    }


def _pick_batch_tile(B, cap):
    # Target >= 4 grid steps (>= 2 per TensorCore under megacore) so input /
    # output DMAs double-buffer behind MXU work. Round to 16 (bf16 sublane
    # tile); once tiles are big, round to 256 to amortize MXU fill/drain.
    tb = _round_up(pl.cdiv(B, 4), 16)
    if tb >= 256:
        tb = _round_up(tb, 256)
    return max(16, min(tb, cap))


def multinet_forward(x, padded_params, *, batch_tile=1024, trim_output=True):
    """x: (B, 200) float32. padded_params: output of pad_params().

    Returns (B, 100) float32 by default; trim_output=False returns the
    lane-dense (B_padded_rows, 128) kernel output (columns 100: are zero) so a
    downstream consumer can slice lazily and skip the extra HBM pass.
    """
    B = x.shape[0]
    p = padded_params

    tb = _pick_batch_tile(B, batch_tile)
    Bp = _round_up(B, tb)
    if Bp != B:
        # Only pad rows (and only when needed); feature dim stays 200.
        x = jnp.pad(x, ((0, Bp - B), (0, 0)))

    grid = (Bp // tb,)
    # Constant block index -> weights/biases stay resident in VMEM across steps.
    const = lambda shape: pl.BlockSpec(shape, lambda i: (0, 0))

    weight_bytes = (D_IN * P_H1 + P_H1 * P_H2 + P_H2 * P_OUT) * 2  # bf16
    bias_bytes = (P_H1 + P_H2 + P_OUT) * 4
    cost = pl.CostEstimate(
        flops=2 * Bp * (D_IN * P_H1 + P_H1 * P_H2 + P_H2 * P_OUT),
        transcendentals=0,
        bytes_accessed=Bp * D_IN * 4 + Bp * P_OUT * 4 + weight_bytes + bias_bytes,
    )

    # Default tiles (<= 1024 rows) fit comfortably in every generation's scoped
    # VMEM default; only very large tiles need a bump (v5e default is 16 MiB).
    # Capped at 48 MiB to stay inside v7x's 64 MiB physical VMEM.
    vmem_limit = (48 << 20) if tb >= 2048 else None

    out_p = pl.pallas_call(
        _mlp_kernel,
        out_shape=jax.ShapeDtypeStruct((Bp, P_OUT), jnp.float32),
        grid_spec=pltpu.PrefetchScalarGridSpec(
            num_scalar_prefetch=0,
            grid=grid,
            in_specs=[
                # Streaming x tile: last dim 200 == full array dim (legal block).
                pl.BlockSpec((tb, D_IN), lambda i: (i, 0)),
                const((D_IN, P_H1)),
                const((1, P_H1)),
                const((P_H1, P_H2)),
                const((1, P_H2)),
                const((P_H2, P_OUT)),
                const((1, P_OUT)),
            ],
            out_specs=pl.BlockSpec((tb, P_OUT), lambda i: (i, 0)),
        ),
        compiler_params=pltpu.CompilerParams(
            dimension_semantics=("parallel",),
            vmem_limit_bytes=vmem_limit,
        ),
        cost_estimate=cost,
    )(x, p["w1"], p["b1"], p["w2"], p["b2"], p["w3"], p["b3"])

    if trim_output:
        return out_p[:B, :D_OUT]
    return out_p


def init_params(key):
    """Deterministic init mimicking nn.Linear's U(-1/sqrt(fan_in), 1/sqrt(fan_in))."""
    ks = jax.random.split(key, 6)

    def linear(kw, kb, fan_in, fan_out):
        bound = 1.0 / jnp.sqrt(fan_in)
        w = jax.random.uniform(kw, (fan_in, fan_out), jnp.float32, -bound, bound)
        b = jax.random.uniform(kb, (1, fan_out), jnp.float32, -bound, bound)
        return w, b

    w1, b1 = linear(ks[0], ks[1], D_IN, D_H1)
    w2, b2 = linear(ks[2], ks[3], D_H1, D_H2)
    w3, b3 = linear(ks[4], ks[5], D_H2, D_OUT)
    return {"w1": w1, "b1": b1, "w2": w2, "b2": b2, "w3": w3, "b3": b3}


def _reference(x, p):
    h = jnp.maximum(x @ p["w1"] + p["b1"], 0.0)
    h = jnp.maximum(h @ p["w2"] + p["b2"], 0.0)
    return h @ p["w3"] + p["b3"]


if __name__ == "__main__":
    key = jax.random.PRNGKey(0)
    k_params, k_x = jax.random.split(key)
    raw_params = init_params(k_params)
    params = pad_params(raw_params)   # pad+cast once, outside the forward path

    # B=512 -> tb=128, grid=(4,): 2 steps per TensorCore under megacore and real
    # double-buffering of the x / out DMAs, while staying small.
    B = 512
    x = jax.random.normal(k_x, (B, D_IN), jnp.float32)

    out = multinet_forward(x, params)
    out = jax.block_until_ready(out)

    ref = _reference(x, raw_params)
    assert out.shape == (B, D_OUT)
    # Tolerance loosened vs. the pure-f32 reference because matmul operands are
    # bf16 (f32 accumulation); error stays well inside this bound.
    assert jnp.allclose(out, ref, atol=5e-2, rtol=5e-2), "mismatch vs reference"
    print("KERNEL_OK")
</pallas_src>

<mosaic_0001>
module attributes {stable_mosaic.version = 11 : i64} {
  func.func @_mlp_kernel(%arg0: i32, %arg1: memref<128x200xf32, #tpu.memory_space<vmem>>, %arg2: memref<200x384xbf16, #tpu.memory_space<vmem>>, %arg3: memref<1x384xf32, #tpu.memory_space<vmem>>, %arg4: memref<384x256xbf16, #tpu.memory_space<vmem>>, %arg5: memref<1x256xf32, #tpu.memory_space<vmem>>, %arg6: memref<256x128xbf16, #tpu.memory_space<vmem>>, %arg7: memref<1x128xf32, #tpu.memory_space<vmem>>, %arg8: memref<128x128xf32, #tpu.memory_space<vmem>>) attributes {dimension_semantics = [#tpu.dimension_semantics<parallel>], iteration_bounds = array<i64: 4>, scalar_prefetch = 0 : i64, scratch_operands = 0 : i64, tpu.core_type = #tpu.core_type<tc>, window_params = [{transform_indices = @transform_0, window_bounds = array<i64: 128, 200>}, {pipeline_mode = #tpu.pipeline_mode<synchronous>, transform_indices = @transform_1, window_bounds = array<i64: 200, 384>}, {pipeline_mode = #tpu.pipeline_mode<synchronous>, transform_indices = @transform_2, window_bounds = array<i64: 1, 384>}, {pipeline_mode = #tpu.pipeline_mode<synchronous>, transform_indices = @transform_3, window_bounds = array<i64: 384, 256>}, {pipeline_mode = #tpu.pipeline_mode<synchronous>, transform_indices = @transform_4, window_bounds = array<i64: 1, 256>}, {pipeline_mode = #tpu.pipeline_mode<synchronous>, transform_indices = @transform_5, window_bounds = array<i64: 256, 128>}, {pipeline_mode = #tpu.pipeline_mode<synchronous>, transform_indices = @transform_6, window_bounds = array<i64: 1, 128>}, {transform_indices = @transform_7, window_bounds = array<i64: 128, 128>}]} {
    %c0 = arith.constant 0 : index
    %c0_0 = arith.constant 0 : index
    %0 = vector.load %arg1[%c0, %c0_0] : memref<128x200xf32, #tpu.memory_space<vmem>>, vector<128x200xf32>
    %1 = arith.truncf %0 : vector<128x200xf32> to vector<128x200xbf16>
    %c0_1 = arith.constant 0 : index
    %c0_2 = arith.constant 0 : index
    %2 = vector.load %arg2[%c0_1, %c0_2] : memref<200x384xbf16, #tpu.memory_space<vmem>>, vector<200x384xbf16>
    %cst = arith.constant dense<0.000000e+00> : vector<128x384xf32>
    %3 = tpu.matmul %1, %2, %cst {dimension_numbers = #tpu.dot_dimension_numbers<[1], [0], [0], [1], [0, 0, 1, 1], [], []>} : vector<128x200xbf16>, vector<200x384xbf16>, vector<128x384xf32> -> vector<128x384xf32>
    %c0_3 = arith.constant 0 : index
    %c0_4 = arith.constant 0 : index
    %4 = vector.load %arg3[%c0_3, %c0_4] : memref<1x384xf32, #tpu.memory_space<vmem>>, vector<1x384xf32>
    %5 = vector.broadcast %4 : vector<1x384xf32> to vector<128x384xf32>
    %6 = arith.addf %3, %5 : vector<128x384xf32>
    %cst_5 = arith.constant 0.000000e+00 : f32
    %7 = vector.broadcast %cst_5 : f32 to vector<128x384xf32>
    %8 = arith.maximumf %6, %7 : vector<128x384xf32>
    %9 = arith.truncf %8 : vector<128x384xf32> to vector<128x384xbf16>
    %c0_6 = arith.constant 0 : index
    %c0_7 = arith.constant 0 : index
    %10 = vector.load %arg4[%c0_6, %c0_7] : memref<384x256xbf16, #tpu.memory_space<vmem>>, vector<384x256xbf16>
    %cst_8 = arith.constant dense<0.000000e+00> : vector<128x256xf32>
    %11 = tpu.matmul %9, %10, %cst_8 {dimension_numbers = #tpu.dot_dimension_numbers<[1], [0], [0], [1], [0, 0, 1, 1], [], []>} : vector<128x384xbf16>, vector<384x256xbf16>, vector<128x256xf32> -> vector<128x256xf32>
    %c0_9 = arith.constant 0 : index
    %c0_10 = arith.constant 0 : index
    %12 = vector.load %arg5[%c0_9, %c0_10] : memref<1x256xf32, #tpu.memory_space<vmem>>, vector<1x256xf32>
    %13 = vector.broadcast %12 : vector<1x256xf32> to vector<128x256xf32>
    %14 = arith.addf %11, %13 : vector<128x256xf32>
    %cst_11 = arith.constant 0.000000e+00 : f32
    %15 = vector.broadcast %cst_11 : f32 to vector<128x256xf32>
    %16 = arith.maximumf %14, %15 : vector<128x256xf32>
    %17 = arith.truncf %16 : vector<128x256xf32> to vector<128x256xbf16>
    %c0_12 = arith.constant 0 : index
    %c0_13 = arith.constant 0 : index
    %18 = vector.load %arg6[%c0_12, %c0_13] : memref<256x128xbf16, #tpu.memory_space<vmem>>, vector<256x128xbf16>
    %cst_14 = arith.constant dense<0.000000e+00> : vector<128x128xf32>
    %19 = tpu.matmul %17, %18, %cst_14 {dimension_numbers = #tpu.dot_dimension_numbers<[1], [0], [0], [1], [0, 0, 1, 1], [], []>} : vector<128x256xbf16>, vector<256x128xbf16>, vector<128x128xf32> -> vector<128x128xf32>
    %c0_15 = arith.constant 0 : index
    %c0_16 = arith.constant 0 : index
    %20 = vector.load %arg7[%c0_15, %c0_16] : memref<1x128xf32, #tpu.memory_space<vmem>>, vector<1x128xf32>
    %21 = vector.broadcast %20 : vector<1x128xf32> to vector<128x128xf32>
    %22 = arith.addf %19, %21 : vector<128x128xf32>
    %c0_17 = arith.constant 0 : index
    %c0_18 = arith.constant 0 : index
    %23 = vector.load %arg8[%c0_17, %c0_18] : memref<128x128xf32, #tpu.memory_space<vmem>>, vector<128x128xf32>
    tpu.vector_store %arg8[%c0_17, %c0_18], %22 {strides = array<i32>} : memref<128x128xf32, #tpu.memory_space<vmem>>, vector<128x128xf32>,
    return
  }
  func.func @transform_0(%arg0: i32) -> (i32, i32) {
    %c0_i32 = arith.constant 0 : i32
    %c0_i32_0 = arith.constant 0 : i32
    return %arg0, %c0_i32 : i32, i32
  }
  func.func @transform_1(%arg0: i32) -> (i32, i32) {
    %c0_i32 = arith.constant 0 : i32
    %c0_i32_0 = arith.constant 0 : i32
    %c0_i32_1 = arith.constant 0 : i32
    return %c0_i32, %c0_i32_0 : i32, i32
  }
  func.func @transform_2(%arg0: i32) -> (i32, i32) {
    %c0_i32 = arith.constant 0 : i32
    %c0_i32_0 = arith.constant 0 : i32
    %c0_i32_1 = arith.constant 0 : i32
    return %c0_i32, %c0_i32_0 : i32, i32
  }
  func.func @transform_3(%arg0: i32) -> (i32, i32) {
    %c0_i32 = arith.constant 0 : i32
    %c0_i32_0 = arith.constant 0 : i32
    %c0_i32_1 = arith.constant 0 : i32
    return %c0_i32, %c0_i32_0 : i32, i32
  }
  func.func @transform_4(%arg0: i32) -> (i32, i32) {
    %c0_i32 = arith.constant 0 : i32
    %c0_i32_0 = arith.constant 0 : i32
    %c0_i32_1 = arith.constant 0 : i32
    return %c0_i32, %c0_i32_0 : i32, i32
  }
  func.func @transform_5(%arg0: i32) -> (i32, i32) {
    %c0_i32 = arith.constant 0 : i32
    %c0_i32_0 = arith.constant 0 : i32
    %c0_i32_1 = arith.constant 0 : i32
    return %c0_i32, %c0_i32_0 : i32, i32
  }
  func.func @transform_6(%arg0: i32) -> (i32, i32) {
    %c0_i32 = arith.constant 0 : i32
    %c0_i32_0 = arith.constant 0 : i32
    %c0_i32_1 = arith.constant 0 : i32
    return %c0_i32, %c0_i32_0 : i32, i32
  }
  func.func @transform_7(%arg0: i32) -> (i32, i32) {
    %c0_i32 = arith.constant 0 : i32
    %c0_i32_0 = arith.constant 0 : i32
    return %arg0, %c0_i32 : i32, i32
  }
}

</mosaic_0001>

<bundles_post_ra>
// kernel: tpu_custom_call.1
= control target key start
LH: loop header
LB: loop body
LE: loop exit
PB: predicated region body
PF: predicated region fallthrough
CT: control target
= control target key end

     0   :  { %12 = vsyncpa [#allocation3], 0  ;;  %s3097_s0 = inlined_call_operand.vmem [shape: f32[512,200], index: 0, kind: input, shape index: {}]   ;;  %s3098_s1 = inlined_call_operand.vmem [shape: bf16[200,384], index: 1, kind: input, shape index: {}]   ;;  %s3099_s2 = inlined_call_operand.vmem [shape: f32[1,384], index: 2, kind: input, shape index: {}]   ;;  %s3100_s3 = inlined_call_operand.vmem [shape: bf16[384,256], index: 3, kind: input, shape index: {}]   ;;  %s3101_s4 = inlined_call_operand.vmem [shape: f32[1,256], index: 4, kind: input, shape index: {}]   ;;  %s3102_s5 = inlined_call_operand.vmem [shape: bf16[256,128], index: 5, kind: input, shape index: {}]   ;;  %s3103_s6 = inlined_call_operand.vmem [shape: f32[1,128], index: 6, kind: input, shape index: {}]   ;;  %s3104_s7 = inlined_call_operand.hbm [shape: f32[512,128], index: 7, kind: output, shape index: {}]  }
   0x1   :  { %14 = vsyncpa [#allocation3 + $0x1], 0  ;;  %s2399_s24 = smov 0   ;;  %s2401_s25 = smov 0  }
   0x2   :  { %s2403_s26 = smov 0   ;;  %s2405_s27 = smov 0  }
   0x3 LB: > { %s2420_s28 = sadd.s32 4294967295, %s2353_s27   ;;  %s1814_s29 = sadd.s32 4294967294, %s2353_s27   ;;  %s2353_s27 = sphi %s2405_s27, %s3110_s27   ;;  %s2349_s26 = sphi %s2403_s26, %s3109_s26   ;;  %s2345_s25 = sphi %s2401_s25, %s3108_s25   ;;  %s2341_s24 = sphi %s2399_s24, %s3107_s24  }
   0x4   : > { %s2424_s30 = sadd.s32 1, %s2353_s27   ;;  %s179_s8 = sadd.s32 1, %s2349_s26 }
   0x5   : > { %s176_s9 = ssub.s32 %s2353_s27, %s2424_s30  ;;  %p189_p0 = scmp.ne.s32.totalorder %s2349_s26, %s2345_s25 }
   0x6   : > { %p177_p1 = scmp.eq.s32.totalorder %s176_s9, 0  ;;  %p190_p2 = scmp.eq.s32.totalorder %s2420_s28, 3 }
   0x7   : > { %p195_p3 = scmp.ne.s32.totalorder %s2345_s25, %s2341_s24  ;;  %p196_p4 = scmp.eq.s32.totalorder %s1814_s29, 3 }
   0x8   : > { %s2435_s10 = scalar_select %p177_p1, %s2349_s26, %s179_s8  }
   0x9   : > { %p2437_p5 = por %p190_p2, %p189_p0  ;;  %p2441_p6 = por %p196_p4, %p195_p3 }
   0xa   : > { %p1817_p7 = scmp.ge.s32.totalorder %s2353_s27, 1  ;;  %p242_p8 = scmp.lt.s32.totalorder %s2353_s27, 5 }
   0xc   : > { %p243_p9 = pnand %p1817_p7, %p242_p8 }
   0xd   : > { %v2152_v0 = vld [vmem:[%s3098_s1 + $0x4] ss:$12 sps:$4 sm:$0xff] (!%p243_p9)   ;;  %v2154_v1 = vld [vmem:[%s3098_s1] ss:$12 sps:$4 sm:$0xff] (!%p243_p9)   ;;  %v2355_v2 = vmov (!%p243_p9), 0   ;;  %s1819_s23 = sshll.u32 (!%p243_p9), %s2420_s28, 4 }
   0xe   : > { %246 = sbr.rel (%p243_p9) target bundleno = 832 (0x340), region = 48  ;;  %747 = vmatprep.subr.bf16.mxu1 (!%p243_p9), %v2355_v2  ;;  %634 = vmatprep.subr.bf16.mxu0 (!%p243_p9), %v2152_v0  ;;  %v2155_v3 = vld [vmem:[%s3098_s1 + $0x1c] ss:$12 sps:$4 sm:$0xff] (!%p243_p9)   ;;  %v2157_v4 = vld [vmem:[%s3098_s1 + $0x18] ss:$12 sps:$4 sm:$0xff] (!%p243_p9)   ;;  %p276_p10 = scmp.lt.s32.totalorder (!%p243_p9), %s1819_s23, 63 }
   0xf   : > { %635 = vmatpush1.bf16.msra.mxu0 (!%p243_p9), %v2154_v1  ;;  %v2158_v5 = vld [vmem:[%s3098_s1 + $0x34] ss:$12 sps:$4 sm:$0xff] (!%p243_p9)   ;;  %v2160_v6 = vld [vmem:[%s3098_s1 + $0x30] ss:$12 sps:$4 sm:$0xff] (!%p243_p9)   ;;  %v2161_v7 = vld [vmem:[%s3098_s1 + $0x4c] ss:$12 sps:$4 sm:$0xff] (!%p243_p9)  }
  0x10   : > { %636 = vmatprep.subr.bf16.mxu0 (!%p243_p9), %v2155_v3  ;;  %v2163_v8 = vld [vmem:[%s3098_s1 + $0x48] ss:$12 sps:$4 sm:$0xff] (!%p243_p9)   ;;  %v2164_v9 = vld [vmem:[%s3098_s1 + $0x64] ss:$12 sps:$4 sm:$0xff] (!%p243_p9)   ;;  %v2182_v11 = vld [vmem:[%s3098_s1 + $0x20] ss:$12 sps:$4 sm:$0xff] (!%p243_p9)  }
  0x11   : > { %v2178_v10 = vld [vmem:[%s3098_s1 + $0x8] ss:$12 sps:$4 sm:$0xff] (!%p243_p9)   ;;  %v2166_v12 = vld [vmem:[%s3098_s1 + $0x60] ss:$12 sps:$4 sm:$0xff] (!%p243_p9)   ;;  %v2186_v14 = vld [vmem:[%s3098_s1 + $0x38] ss:$12 sps:$4 sm:$0xff] (!%p243_p9)  }
  0x12   : > { %748 = vmatpush1.bf16.msra.mxu1 (!%p243_p9), %v2178_v10  ;;  %v2167_v13 = vld [vmem:[%s3098_s1 + $0x7c] ss:$12 sps:$4 sm:$0xff] (!%p243_p9)   ;;  %v2169_v15 = vld [vmem:[%s3098_s1 + $0x78] ss:$12 sps:$4 sm:$0xff] (!%p243_p9)   ;;  %v2170_v16 = vld [vmem:[%s3098_s1 + $0x94] ss:$12 sps:$4 sm:$0xff] (!%p243_p9)  }
  0x13   : > { %637 = vmatpush1.bf16.msra.mxu0 (!%p243_p9), %v2157_v4  ;;  %749 = vmatprep.subr.bf16.mxu1 (!%p243_p9), %v2355_v2  ;;  %vm599_vm0 = vcmask (!%p243_p9), 588800   ;;  %v2190_v19 = vld [vmem:[%s3098_s1 + $0x50] ss:$12 sps:$4 sm:$0xff] (!%p243_p9)   ;;  %v2173_v22 = vld [vmem:[%s3098_s1 + $0xac] ss:$12 sps:$4 sm:$0xff] (!%p243_p9)   ;;  %v380_v35 = vld [vmem:[%s3098_s1 + $0x120] sm:$0xff] (!%p243_p9) }
  0x14   : > { %638 = vmatprep.subr.bf16.mxu0 (!%p243_p9), %v2158_v5  ;;  %v2172_v21 = vld [vmem:[%s3098_s1 + $0x90] ss:$12 sps:$4 sm:$0xff] (!%p243_p9)   ;;  %v2193_v23 = vld [vmem:[%s3098_s1 + $0x68] ss:$12 sps:$4 sm:$0xff] (!%p243_p9)   ;;  %v2195_v26 = vld [vmem:[%s3098_s1 + $0x80] ss:$12 sps:$4 sm:$0xff] (!%p243_p9)   ;;  %v1859_v38 = vcombine.high (!%p243_p9), %v380_v35, %v380_v35  ;;  %v1858_v39 = vcombine.low (!%p243_p9), %v380_v35, %v380_v35 }
  0x15   : > { %s3112_s23 = smov (!%p276_p10, %s1819_s23), 63  ;;  %v2175_v24 = vld [vmem:[%s3098_s1 + $0xa8] ss:$12 sps:$4 sm:$0xff]   ;;  %v2176_v25 = vld [vmem:[%s3098_s1 + $0xc4] ss:$12 sps:$4 sm:$0xff]   ;;  %vm624_vm1 = vcmask 1043456  }
  0x16   : > { %s1948_s8 = sshll.u32 %s3112_s23, 4  ;;  %750 = vmatpush1.bf16.msra.mxu1 %v2182_v11  ;;  %v2179_v27 = vld [vmem:[%s3098_s1 + $0xc0] ss:$12 sps:$4 sm:$0xff]   ;;  %v2180_v28 = vld [vmem:[%s3098_s1 + $0xdc] ss:$12 sps:$4 sm:$0xff]   ;;  %v626_v44 = vsel %vm624_vm1, %v1858_v39, 0 }
  0x17   : > { %639 = vmatpush1.bf16.msra.mxu0 %v2160_v6  ;;  %s2495_s18 = scalar_lea.vmem %s3097_s0, %s1948_s8  ;;  %751 = vmatprep.subr.bf16.mxu1 %v2355_v2  ;;  %v2196_v29 = vld [vmem:[%s3098_s1 + $0x98] ss:$12 sps:$4 sm:$0xff]   ;;  %v2184_v31 = vld [vmem:[%s3098_s1 + $0xf4] ss:$12 sps:$4 sm:$0xff]   ;;  %v2197_v32 = vld [vmem:[%s3098_s1 + $0xb0] ss:$12 sps:$4 sm:$0xff]  }
  0x18   : > { %640 = vmatprep.subr.bf16.mxu0 %v2161_v7  ;;  %v285_v17 = vld [vmem:[%s2495_s18 + $0x8] sm:$0xff]  ;;  %v287_v18 = vld [vmem:[%s2495_s18 + $0x18] sm:$0xff]  ;;  %v284_v40 = vld [vmem:[%s2495_s18] sm:$0xff]  ;;  %s272_s29 = sand.u32 1, %s2345_s25   ;;  %s1949_s15 = sshll.u32 %s2420_s28, 11 }
  0x19   : > { %v317_v20 = vpack.c.bf16 %v287_v18, %v285_v17  ;;  %v2183_v30 = vld [vmem:[%s3098_s1 + $0xd8] ss:$12 sps:$4 sm:$0xff]   ;;  %v2187_v33 = vld [vmem:[%s3098_s1 + $0xf0] ss:$12 sps:$4 sm:$0xff]   ;;  %v2198_v36 = vld [vmem:[%s3098_s1 + $0xc8] ss:$12 sps:$4 sm:$0xff]   ;;  %s3047_s19 = scalar_lea.hbm %s3104_s7, %s1949_s15 }
  0x1a   : > { %752 = vmatpush1.bf16.msra.mxu1 %v2186_v14  ;;  %v2188_v34 = vld [vmem:[%s3098_s1 + $0x10c] ss:$12 sps:$4 sm:$0xff]   ;;  %v2191_v37 = vld [vmem:[%s3098_s1 + $0x108] ss:$12 sps:$4 sm:$0xff]   ;;  %v288_v51 = vld [vmem:[%s2495_s18 + $0x20] sm:$0xff]  ;;  %s1818_s8 = sshll.u32 %s272_s29, 7 }
  0x1b   : > { %641 = vmatpush1.bf16.msra.mxu0 %v2163_v8  ;;  %753 = vmatprep.subr.bf16.mxu1 %v2355_v2  ;;  %v2199_v41 = vld [vmem:[%s3098_s1 + $0xe0] ss:$12 sps:$4 sm:$0xff]   ;;  %v286_v42 = vld [vmem:[%s2495_s18 + $0x10] sm:$0xff]  ;;  %v291_v45 = vld [vmem:[%s2495_s18 + $0x38] sm:$0xff]  ;;  %s3012_s14 = scalar_lea.vmem [#allocation2], %s1818_s8  ;;  %s3056_s28 = scalar_lea.sflag [#allocation3], %s272_s29 }
  0x1c   : > { %642 = vmatprep.subr.bf16.mxu0 %v2164_v9  ;;  %1862 = vmatprep.mubr.msk.bf16.mxu0 %vm599_vm0, %v317_v20  ;;  %v289_v43 = vld [vmem:[%s2495_s18 + $0x28] sm:$0xff]  ;;  %v316_v47 = vpack.c.bf16 %v286_v42, %v284_v40  ;;  %v2200_v48 = vld [vmem:[%s3098_s1 + $0xf8] ss:$12 sps:$4 sm:$0xff]   ;;  %v290_v52 = vld [vmem:[%s2495_s18 + $0x30] sm:$0xff]  ;;  %s1752_s16 = sshll.u32 %s3012_s14, 4  ;;  %s2356_s20 = smov [#allocation2]   ;;  %s3049_s16 = int_to_ptr.vmem [resolvable:$true] %s1752_s16 }
  0x1d   : > { %1870 = vmatprep.mubr.msk.bf16.mxu1 %vm599_vm0, %v317_v20  ;;  %v2205_v46 = vld [vmem:[%s3100_s3 + $0x4] ss:$8 sps:$4 sm:$0xff]   ;;  %v319_v49 = vpack.c.bf16 %v291_v45, %v289_v43  ;;  %v2203_v50 = vld [vmem:[%s3100_s3] ss:$8 sps:$4 sm:$0xff]   ;;  %v2208_v53 = vld [vmem:[%s3100_s3 + $0x14] ss:$8 sps:$4 sm:$0xff]   ;;  %v318_v60 = vpack.c.bf16 %v290_v52, %v288_v51 }
  0x1e   : > { %754 = vmatpush1.bf16.msra.mxu1 %v2190_v19  ;;  %v2201_v54 = vld [vmem:[%s3098_s1 + $0x110] ss:$12 sps:$4 sm:$0xff]   ;;  %v293_v55 = vld [vmem:[%s2495_s18 + $0x48] sm:$0xff]  ;;  %v292_v1 = vld [vmem:[%s2495_s18 + $0x40] sm:$0xff]  ;;  %s2291_s23 = scalar_lea.vmem %s3049_s16, 2048  ;;  %s2295_s21 = sshll.u32 %s2356_s20, 4  ;;  %s2296_s21 = int_to_ptr.vmem [resolvable:$false] %s2295_s21 }
  0x1f   : > { %643 = vmatpush1.bf16.msra.mxu0 %v2166_v12  ;;  %755 = vmatprep.subr.bf16.mxu1 %v2355_v2  ;;  %v2202_v56 = vld [vmem:[%s3098_s1 + $0x128] ss:$0 sps:$4 sm:$0xff]   ;;  %v295_v57 = vld [vmem:[%s2495_s18 + $0x58] sm:$0xff]  ;;  %v2211_v59 = vld [vmem:[%s3100_s3 + $0x24] ss:$8 sps:$4 sm:$0xff]   ;;  %p2292_p11 = scmp.ne.s32.totalorder %s3049_s16, %s2291_s23  ;;  %s2297_s22 = scalar_lea.vmem %s2296_s21, 4096 }
  0x20   : > { %644 = vmatprep.subr.bf16.mxu0 %v2167_v13  ;;  %v2206_v58 = vld [vmem:[%s3100_s3 + $0x10] ss:$8 sps:$4 sm:$0xff]   ;;  %v2209_v61 = vld [vmem:[%s3100_s3 + $0x20] ss:$8 sps:$4 sm:$0xff]   ;;  %v321_v62 = vpack.c.bf16 %v295_v57, %v293_v55  ;;  %v632_v63 = vsel %vm624_vm1, %v2202_v56, 0  ;;  %p2298_p0 = scmp.lt.s32.totalorder %s3049_s16, %s2296_s21  ;;  %p2299_p1 = scmp.lt.s32.totalorder %s2297_s22, %s2291_s23 }
  0x21   : > { %v2214_v0 = vld [vmem:[%s3100_s3 + $0x34] ss:$8 sps:$4 sm:$0xff]   ;;  %v297_v4 = vld [vmem:[%s2495_s18 + $0x68] sm:$0xff]  ;;  %v2212_v6 = vld [vmem:[%s3100_s3 + $0x30] ss:$8 sps:$4 sm:$0xff]   ;;  %p2293_p12 = pnand %p2292_p11, %p2437_p5 }
  0x22   : > { %756 = vmatpush1.bf16.msra.mxu1 %v2193_v23  ;;  %v294_v3 = vld [vmem:[%s2495_s18 + $0x50] sm:$0xff]  ;;  %v299_v5 = vld [vmem:[%s2495_s18 + $0x78] sm:$0xff]  ;;  %v2217_v7 = vld [vmem:[%s3100_s3 + $0x44] ss:$8 sps:$4 sm:$0xff]   ;;  %p2300_p2 = por %p2299_p1, %p2298_p0 }
  0x23   : > { %645 = vmatpush1.bf16.msra.mxu0 %v2169_v15  ;;  %757 = vmatprep.subr.bf16.mxu1 %v2355_v2  ;;  %v320_v8 = vpack.c.bf16 %v294_v3, %v292_v1  ;;  %v2215_v9 = vld [vmem:[%s3100_s3 + $0x40] ss:$8 sps:$4 sm:$0xff]   ;;  %v323_v10 = vpack.c.bf16 %v299_v5, %v297_v4  ;;  %v2220_v11 = vld [vmem:[%s3100_s3 + $0x54] ss:$8 sps:$4 sm:$0xff]   ;;  %v2223_v17 = vld [vmem:[%s3100_s3 + $0x64] ss:$8 sps:$4 sm:$0xff]   ;;  %p2294_p13 = pneg %p2293_p12 }
  0x24   : > { %646 = vmatprep.subr.bf16.mxu0 %v2170_v16  ;;  %v296_v12 = vld [vmem:[%s2495_s18 + $0x60] sm:$0xff]  ;;  %v298_v13 = vld [vmem:[%s2495_s18 + $0x70] sm:$0xff]  ;;  %v301_v14 = vld [vmem:[%s2495_s18 + $0x88] sm:$0xff] }
  0x25   : > { %v303_v15 = vld [vmem:[%s2495_s18 + $0x98] sm:$0xff]  ;;  %v322_v18 = vpack.c.bf16 %v298_v13, %v296_v12  ;;  %v2221_v20 = vld [vmem:[%s3100_s3 + $0x60] ss:$8 sps:$4 sm:$0xff]   ;;  %v302_v23 = vld [vmem:[%s2495_s18 + $0x90] sm:$0xff]  ;;  %p2301_p3 = pnand %p2300_p2, %p2294_p13 }
  0x26   : > { %758 = vmatpush1.bf16.msra.mxu1 %v2195_v26  ;;  %v2218_v16 = vld [vmem:[%s3100_s3 + $0x50] ss:$8 sps:$4 sm:$0xff]   ;;  %v325_v19 = vpack.c.bf16 %v303_v15, %v301_v14  ;;  %v2233_v40 = vld [vmem:[%s3100_s3 + $0xa0] ss:$8 sps:$4 sm:$0xff]   ;;  %v2244_v51 = vld [vmem:[%s3100_s3 + $0xd4] ss:$8 sps:$4 sm:$0xff]  }
  0x27   : > { %647 = vmatpush1.bf16.msra.mxu0 %v2172_v21  ;;  %759 = vmatprep.subr.bf16.mxu1 %v2355_v2  ;;  %v2226_v21 = vld [vmem:[%s3100_s3 + $0x74] ss:$8 sps:$4 sm:$0xff]   ;;  %v2224_v26 = vld [vmem:[%s3100_s3 + $0x70] ss:$8 sps:$4 sm:$0xff]   ;;  %v308_v42 = vld [vmem:[%s2495_s18 + $0xc0] sm:$0xff] }
  0x28   : > { %648 = vmatprep.subr.bf16.mxu0 %v2173_v22  ;;  %v300_v22 = vld [vmem:[%s2495_s18 + $0x80] sm:$0xff]  ;;  %v311_v35 = vld [vmem:[%s2495_s18 + $0xd8] sm:$0xff]  ;;  %v310_v43 = vld [vmem:[%s2495_s18 + $0xd0] sm:$0xff] }
  0x29   : > { %v315_v45 = vld [vmem:[%s2495_s18 + $0xf8] sm:$0xff]  ;;  %v312_v52 = vld [vmem:[%s2495_s18 + $0xe0] sm:$0xff] }
  0x2a   : > { %760 = vmatpush1.bf16.msra.mxu1 %v2196_v29  ;;  %v2247_v56 = vld [vmem:[%s3100_s3 + $0xe4] ss:$8 sps:$4 sm:$0xff]   ;;  %v2245_v57 = vld [vmem:[%s3100_s3 + $0xe0] ss:$8 sps:$4 sm:$0xff]  }
  0x2b   : > { %649 = vmatpush1.bf16.msra.mxu0 %v2175_v24  ;;  %761 = vmatprep.subr.bf16.mxu1 %v2355_v2  ;;  %v305_v24 = vld [vmem:[%s2495_s18 + $0xa8] sm:$0xff]  ;;  %v382_v1 = vld [vmem:[%s3099_s2] sm:$0x7] }
  0x2c   : > { %650 = vmatprep.subr.bf16.mxu0 %v2176_v25  ;;  %v307_v25 = vld [vmem:[%s2495_s18 + $0xb8] sm:$0xff] }
  0x2d   : > { %v327_v29 = vpack.c.bf16 %v307_v25, %v305_v24 }
  0x2e   : > { %762 = vmatpush1.bf16.msra.mxu1 %v2197_v32  ;;  %v304_v32 = vld [vmem:[%s2495_s18 + $0xa0] sm:$0xff] }
  0x2f   : > { %651 = vmatpush1.bf16.msra.mxu0 %v2179_v27  ;;  %763 = vmatprep.subr.bf16.mxu1 %v2355_v2  ;;  %v2229_v27 = vld [vmem:[%s3100_s3 + $0x84] ss:$8 sps:$4 sm:$0xff]  }
  0x30   : > { %652 = vmatprep.subr.bf16.mxu0 %v2180_v28  ;;  %v324_v28 = vpack.c.bf16 %v302_v23, %v300_v22  ;;  %v2251_v22 = vld [vmem:[%s3100_s3 + $0x100] ss:$8 sps:$4 sm:$0xff]  }
  0x32   : > { %764 = vmatpush1.bf16.msra.mxu1 %v2198_v36  ;;  %v2230_v36 = vld [vmem:[%s3100_s3 + $0x90] ss:$8 sps:$4 sm:$0xff]  }
  0x33   : > { %653 = vmatpush1.bf16.msra.mxu0 %v2183_v30  ;;  %765 = vmatprep.subr.bf16.mxu1 %v2355_v2  ;;  %v2227_v30 = vld [vmem:[%s3100_s3 + $0x80] ss:$8 sps:$4 sm:$0xff]  }
  0x34   : > { %654 = vmatprep.subr.bf16.mxu0 %v2184_v31  ;;  %v2232_v31 = vld [vmem:[%s3100_s3 + $0x94] ss:$8 sps:$4 sm:$0xff]  }
  0x36   : > { %766 = vmatpush1.bf16.msra.mxu1 %v2199_v41  ;;  %v2238_v41 = vld [vmem:[%s3100_s3 + $0xb4] ss:$8 sps:$4 sm:$0xff]  }
  0x37   : > { %655 = vmatpush1.bf16.msra.mxu0 %v2187_v33  ;;  %767 = vmatprep.subr.bf16.mxu1 %v2355_v2  ;;  %v306_v33 = vld [vmem:[%s2495_s18 + $0xb0] sm:$0xff] }
  0x38   : > { %656 = vmatprep.subr.bf16.mxu0 %v2188_v34  ;;  %v309_v34 = vld [vmem:[%s2495_s18 + $0xc8] sm:$0xff] }
  0x39   : > { %v329_v39 = vpack.c.bf16 %v311_v35, %v309_v34 }
  0x3a   : > { %768 = vmatpush1.bf16.msra.mxu1 %v2200_v48  ;;  %v328_v48 = vpack.c.bf16 %v310_v43, %v308_v42 }
  0x3b   : > { %657 = vmatpush1.bf16.msra.mxu0 %v2191_v37  ;;  %769 = vmatprep.subr.bf16.mxu1 %v2355_v2  ;;  %v2235_v37 = vld [vmem:[%s3100_s3 + $0xa4] ss:$8 sps:$4 sm:$0xff]  }
  0x3c   : > { %1861 = vmatprep.subr.msk.bf16.mxu0 %vm624_vm1, %v1859_v38  ;;  %v326_v38 = vpack.c.bf16 %v306_v33, %v304_v32  ;;  %v2254_v33 = vld [vmem:[%s3100_s3 + $0x110] ss:$8 sps:$4 sm:$0xff]  }
  0x3e   : > { %770 = vmatpush1.bf16.msra.mxu1 %v2201_v54  ;;  %v2242_v54 = vld [vmem:[%s3100_s3 + $0xd0] ss:$8 sps:$4 sm:$0xff]  }
  0x3f   : > { %659 = vmatpush1.bf16.msra.mxu0 %v626_v44  ;;  %771 = vmatprep.subr.bf16.mxu1 %v2355_v2  ;;  %v313_v44 = vld [vmem:[%s2495_s18 + $0xe8] sm:$0xff] }
  0x40   : > { %1216 = vmatprep.subr.bf16.mxu0 %v2205_v46 }
  0x42   : > { %667 = vmatmul.mubr.bf16.vlgmr.msra.gmra.mrb[0].mxu0 %v316_v47  ;;  %772 = vmatpush1.bf16.msra.mxu1 %v632_v63 }
  0x43   : > { %1863 = vmatprep.mubr.msk.bf16.mxu0 %vm599_vm0, %v319_v49  ;;  %1217 = vmatpush1.bf16.msra.mxu0 %v2203_v50 }
  0x44   : > { %1218 = vmatprep.subr.bf16.mxu0 %v2208_v53  ;;  %2014 = vmatprep.subr.bf16.mxu1 %v2205_v46  ;;  %v2236_v46 = vld [vmem:[%s3100_s3 + $0xb0] ss:$8 sps:$4 sm:$0xff]  }
  0x45   : > { %780 = vmatmul.mubr.bf16.vlgmr.msra.gmra.mrb[0].mxu1 %v316_v47  ;;  %v2241_v47 = vld [vmem:[%s3100_s3 + $0xc4] ss:$8 sps:$4 sm:$0xff]  }
  0x46   : > { %1871 = vmatprep.mubr.msk.bf16.mxu1 %vm599_vm0, %v319_v49  ;;  %2030 = vmatpush1.bf16.msra.mxu1 %v2203_v50  ;;  %v331_v49 = vpack.c.bf16 %v315_v45, %v313_v44  ;;  %v2239_v50 = vld [vmem:[%s3100_s3 + $0xc0] ss:$8 sps:$4 sm:$0xff]  }
  0x47   : > { %1219 = vmatpush1.bf16.msra.mxu0 %v2206_v58  ;;  %2015 = vmatprep.subr.bf16.mxu1 %v2208_v53  ;;  %v314_v53 = vld [vmem:[%s2495_s18 + $0xf0] sm:$0xff] }
  0x48   : > { %1220 = vmatprep.subr.bf16.mxu0 %v2211_v59  ;;  %v330_v55 = vpack.c.bf16 %v314_v53, %v312_v52  ;;  %v2262_v52 = vld [vmem:[%s3100_s3 + $0x134] ss:$8 sps:$4 sm:$0xff]  }
  0x4a   : > { %677 = vmatmul.mubr.bf16.gmra.mrb[4].mxu0 %v318_v60  ;;  %2031 = vmatpush1.bf16.msra.mxu1 %v2206_v58  ;;  %v2250_v58 = vld [vmem:[%s3100_s3 + $0xf4] ss:$8 sps:$4 sm:$0xff]  }
  0x4b   : > { %1864 = vmatprep.mubr.msk.bf16.mxu0 %vm599_vm0, %v321_v62  ;;  %1221 = vmatpush1.bf16.msra.mxu0 %v2209_v61 }
  0x4c   : > { %1222 = vmatprep.subr.bf16.mxu0 %v2214_v0  ;;  %2016 = vmatprep.subr.bf16.mxu1 %v2211_v59  ;;  %v2248_v59 = vld [vmem:[%s3100_s3 + $0xf0] ss:$8 sps:$4 sm:$0xff]  }
  0x4d   : > { %788 = vmatmul.mubr.bf16.gmra.mrb[4].mxu1 %v318_v60  ;;  %v2253_v60 = vld [vmem:[%s3100_s3 + $0x104] ss:$8 sps:$4 sm:$0xff]  }
  0x4e   : > { %1872 = vmatprep.mubr.msk.bf16.mxu1 %vm599_vm0, %v321_v62  ;;  %2032 = vmatpush1.bf16.msra.mxu1 %v2209_v61  ;;  %v2275_v61 = vld [vmem:[%s3102_s5 + $0x40] sm:$0xff]   ;;  %v384_v62 = vlaneseq }
  0x4f   : > { %1223 = vmatpush1.bf16.msra.mxu0 %v2212_v6  ;;  %2017 = vmatprep.subr.bf16.mxu1 %v2214_v0 }
  0x50   : > { %1224 = vmatprep.subr.bf16.mxu0 %v2217_v7  ;;  %v2733_v63 = vshrl.u32 %v384_v62, 7 }
  0x52   : > { %687 = vmatmul.mubr.bf16.gmra.mrb[8].mxu0 %v320_v8  ;;  %2033 = vmatpush1.bf16.msra.mxu1 %v2212_v6  ;;  %v386_v0 = vsub.s32 0, %v2733_v63  ;;  %v390_v3 = vsub.s32 1, %v2733_v63  ;;  %v394_v14 = vsub.s32 2, %v2733_v63 }
  0x53   : > { %1865 = vmatprep.mubr.msk.bf16.mxu0 %vm599_vm0, %v323_v10  ;;  %1225 = vmatpush1.bf16.msra.mxu0 %v2215_v9 }
  0x54   : > { %1226 = vmatprep.subr.bf16.mxu0 %v2220_v11  ;;  %2018 = vmatprep.subr.bf16.mxu1 %v2217_v7  ;;  %v2742_v4 = vrot.slane %v382_v1, %v386_v0  ;;  %v2746_v5 = vrot.slane %v382_v1, %v390_v3  ;;  %v2756_v23 = vrot.slane %v382_v1, %v394_v14 }
  0x55   : > { %796 = vmatmul.mubr.bf16.gmra.mrb[8].mxu1 %v320_v8 }
  0x56   : > { %1873 = vmatprep.mubr.msk.bf16.mxu1 %vm599_vm0, %v323_v10  ;;  %2034 = vmatpush1.bf16.msra.mxu1 %v2215_v9 }
  0x57   : > { %1227 = vmatpush1.bf16.msra.mxu0 %v2218_v16  ;;  %2019 = vmatprep.subr.bf16.mxu1 %v2220_v11 }
  0x58   : > { %1228 = vmatprep.subr.bf16.mxu0 %v2223_v17 }
  0x5a   : > { %697 = vmatmul.mubr.bf16.gmra.mrb[12].mxu0 %v322_v18  ;;  %2035 = vmatpush1.bf16.msra.mxu1 %v2218_v16 }
  0x5b   : > { %1866 = vmatprep.mubr.msk.bf16.mxu0 %vm599_vm0, %v325_v19  ;;  %1229 = vmatpush1.bf16.msra.mxu0 %v2221_v20 }
  0x5c   : > { %1230 = vmatprep.subr.bf16.mxu0 %v2226_v21  ;;  %2020 = vmatprep.subr.bf16.mxu1 %v2223_v17 }
  0x5d   : > { %804 = vmatmul.mubr.bf16.gmra.mrb[12].mxu1 %v322_v18 }
  0x5e   : > { %1874 = vmatprep.mubr.msk.bf16.mxu1 %vm599_vm0, %v325_v19  ;;  %2036 = vmatpush1.bf16.msra.mxu1 %v2221_v20 }
  0x5f   : > { %1231 = vmatpush1.bf16.msra.mxu0 %v2224_v26  ;;  %2021 = vmatprep.subr.bf16.mxu1 %v2226_v21 }
  0x60   : > { %1232 = vmatprep.subr.bf16.mxu0 %v2229_v27 }
  0x62   : > { %707 = vmatmul.mubr.bf16.gmra.mrb[16].mxu0 %v324_v28  ;;  %2037 = vmatpush1.bf16.msra.mxu1 %v2224_v26  ;;  %v2256_v26 = vld [vmem:[%s3100_s3 + $0x114] ss:$8 sps:$4 sm:$0xff]  }
  0x63   : > { %1867 = vmatprep.mubr.msk.bf16.mxu0 %vm599_vm0, %v327_v29  ;;  %1233 = vmatpush1.bf16.msra.mxu0 %v2227_v30 }
  0x64   : > { %1234 = vmatprep.subr.bf16.mxu0 %v2232_v31  ;;  %2022 = vmatprep.subr.bf16.mxu1 %v2229_v27 }
  0x65   : > { %812 = vmatmul.mubr.bf16.gmra.mrb[16].mxu1 %v324_v28 }
  0x66   : > { %1875 = vmatprep.mubr.msk.bf16.mxu1 %vm599_vm0, %v327_v29  ;;  %2038 = vmatpush1.bf16.msra.mxu1 %v2227_v30 }
  0x67   : > { %1235 = vmatpush1.bf16.msra.mxu0 %v2230_v36  ;;  %2023 = vmatprep.subr.bf16.mxu1 %v2232_v31 }
  0x68   : > { %1236 = vmatprep.subr.bf16.mxu0 %v2235_v37 }
  0x6a   : > { %717 = vmatmul.mubr.bf16.gmra.mrb[20].mxu0 %v326_v38  ;;  %2039 = vmatpush1.bf16.msra.mxu1 %v2230_v36 }
  0x6b   : > { %1868 = vmatprep.mubr.msk.bf16.mxu0 %vm599_vm0, %v329_v39  ;;  %1237 = vmatpush1.bf16.msra.mxu0 %v2233_v40 }
  0x6c   : > { %1238 = vmatprep.subr.bf16.mxu0 %v2238_v41  ;;  %2024 = vmatprep.subr.bf16.mxu1 %v2235_v37 }
  0x6d   : > { %820 = vmatmul.mubr.bf16.gmra.mrb[20].mxu1 %v326_v38  ;;  %v2259_v38 = vld [vmem:[%s3100_s3 + $0x124] ss:$8 sps:$4 sm:$0xff]  }
  0x6e   : > { %1876 = vmatprep.mubr.msk.bf16.mxu1 %vm599_vm0, %v329_v39  ;;  %2040 = vmatpush1.bf16.msra.mxu1 %v2233_v40 }
  0x6f   : > { %1239 = vmatpush1.bf16.msra.mxu0 %v2236_v46  ;;  %2025 = vmatprep.subr.bf16.mxu1 %v2238_v41 }
  0x70   : > { %1240 = vmatprep.subr.bf16.mxu0 %v2241_v47 }
  0x72   : > { %727 = vmatmul.mubr.bf16.gmra.mrb[24].mxu0 %v328_v48  ;;  %2041 = vmatpush1.bf16.msra.mxu1 %v2236_v46 }
  0x73   : > { %1869 = vmatprep.mubr.msk.bf16.mxu0 %vm599_vm0, %v331_v49  ;;  %1241 = vmatpush1.bf16.msra.mxu0 %v2239_v50 }
  0x74   : > { %1242 = vmatprep.subr.bf16.mxu0 %v2244_v51  ;;  %2026 = vmatprep.subr.bf16.mxu1 %v2241_v47 }
  0x75   : > { %828 = vmatmul.mubr.bf16.gmra.mrb[24].mxu1 %v328_v48  ;;  %v2257_v48 = vld [vmem:[%s3100_s3 + $0x120] ss:$8 sps:$4 sm:$0xff]  }
  0x76   : > { %1877 = vmatprep.mubr.msk.bf16.mxu1 %vm599_vm0, %v331_v49  ;;  %2042 = vmatpush1.bf16.msra.mxu1 %v2239_v50 }
  0x77   : > { %1243 = vmatpush1.bf16.msra.mxu0 %v2242_v54  ;;  %2027 = vmatprep.subr.bf16.mxu1 %v2244_v51 }
  0x78   : > { %1244 = vmatprep.subr.bf16.mxu0 %v2247_v56 }
  0x7a   : > { %737 = vmatmul.mubr.bf16.gmra.mrb[28].mxu0 %v330_v55  ;;  %2043 = vmatpush1.bf16.msra.mxu1 %v2242_v54 }
  0x7b   : > { %2028 = vmatprep.subr.bf16.mxu1 %v2247_v56  ;;  %1245 = vmatpush1.bf16.msra.mxu0 %v2245_v57 }
  0x7c   : > { %1246 = vmatprep.subr.bf16.mxu0 %v2250_v58 }
  0x7d   : > { %836 = vmatmul.mubr.bf16.gmra.mrb[28].mxu1 %v330_v55 }
  0x7e   : > { %2044 = vmatpush1.bf16.msra.mxu1 %v2245_v57 }
  0x7f   : > { %2029 = vmatprep.subr.bf16.mxu1 %v2250_v58  ;;  %1247 = vmatpush1.bf16.msra.mxu0 %v2248_v59 }
  0x80   : > { %1329 = vmatprep.subr.bf16.mxu0 %v2253_v60  ;;  %v2260_v60 = vld [vmem:[%s3100_s3 + $0x130] ss:$8 sps:$4 sm:$0xff]  }
  0x82   : > { %2045 = vmatpush1.bf16.msra.mxu1 %v2248_v59 }
  0x83   : > { %1950 = vmatprep.subr.bf16.mxu1 %v2275_v61 }
 0x115   : > { %v668_v6 = vpop.f32.mrb[0].mxu0 }
 0x116   : > { %v669_v7 = vadd.f32 %v668_v6, %v2742_v4  ;;  %v670_v8 = vpop.f32.mrb[1].mxu0 }
 0x117   : > { %v671_v9 = vadd.f32 %v670_v8, %v2746_v5  ;;  %v672_v10 = vpop.f32.mrb[2].mxu0 }
 0x118   : > { %v673_v11 = vadd.f32 %v672_v10, %v2742_v4  ;;  %v674_v12 = vpop.f32.mrb[3].mxu0  ;;  %v844_v15 = vmax.f32 %v669_v7, 0.0  ;;  %v781_v31 = vpop.f32.mrb[0].mxu1  ;;  %v2265_v7 = vld [vmem:[%s3100_s3 + $0x144] ss:$8 sps:$4 sm:$0xff]  }
 0x119   : > { %v675_v13 = vadd.f32 %v674_v12, %v2746_v5  ;;  %v845_v17 = vmax.f32 %v671_v9, 0.0  ;;  %v782_v34 = vadd.f32 %v781_v31, %v2756_v23  ;;  %v783_v35 = vpop.f32.mrb[1].mxu1 }
 0x11a   : > { %v847_v16 = vmax.f32 %v673_v11, 0.0  ;;  %v784_v39 = vpop.f32.mrb[2].mxu1  ;;  %v2271_v35 = vld [vmem:[%s3100_s3 + $0x164] ss:$8 sps:$4 sm:$0xff]  }
 0x11b   : > { %v848_v18 = vmax.f32 %v675_v13, 0.0  ;;  %v846_v42 = vmax.f32 %v782_v34, 0.0  ;;  %v785_v43 = vadd.f32 %v784_v39, %v2756_v23  ;;  %v786_v44 = vpop.f32.mrb[3].mxu1 }
 0x11c   : > { %v892_v19 = vpack.c.bf16 %v847_v16, %v844_v15  ;;  %v2269_v44 = vld [vmem:[%s3100_s3 + $0x160] ss:$8 sps:$4 sm:$0xff]  }
 0x11d   : > { %v893_v20 = vpack.c.bf16 %v848_v18, %v845_v17  ;;  %v678_v21 = vpop.f32.mrb[4].mxu0  ;;  %v849_v49 = vmax.f32 %v785_v43, 0.0  ;;  %v2263_v17 = vld [vmem:[%s3100_s3 + $0x140] ss:$8 sps:$4 sm:$0xff]  }
 0x11e   : > { %v679_v24 = vadd.f32 %v678_v21, %v2742_v4  ;;  %v680_v25 = vpop.f32.mrb[5].mxu0  ;;  %v2268_v21 = vld [vmem:[%s3100_s3 + $0x154] ss:$8 sps:$4 sm:$0xff]  }
 0x11f   : > { %v681_v27 = vadd.f32 %v680_v25, %v2746_v5  ;;  %v682_v28 = vpop.f32.mrb[6].mxu0  ;;  %1248 = vmatprep.mubr.bf16.mxu0 %v893_v20  ;;  %v2781_v55 = vpack.c.bf16 %v849_v49, %v846_v42 }
 0x120   : > { %v683_v29 = vadd.f32 %v682_v28, %v2742_v4  ;;  %v684_v30 = vpop.f32.mrb[7].mxu0  ;;  %1249 = vmatmul.mubr.bf16.vlgmr.msra.gmra.mrb[32].mxu0 %v892_v19  ;;  %v850_v36 = vmax.f32 %v679_v24, 0.0  ;;  %v789_v58 = vpop.f32.mrb[4].mxu1 }
 0x121   : > { %v685_v32 = vadd.f32 %v684_v30, %v2746_v5  ;;  %1330 = vmatpush1.bf16.msra.mxu0 %v2251_v22  ;;  %v851_v40 = vmax.f32 %v681_v27, 0.0  ;;  %v790_v61 = vadd.f32 %v789_v58, %v2756_v23  ;;  %v791_v62 = vpop.f32.mrb[5].mxu1  ;;  %v2266_v30 = vld [vmem:[%s3100_s3 + $0x150] ss:$8 sps:$4 sm:$0xff]  }
 0x122   : > { %v853_v37 = vmax.f32 %v683_v29, 0.0  ;;  %1331 = vmatprep.subr.bf16.mxu0 %v2256_v26  ;;  %v792_v8 = vpop.f32.mrb[6].mxu1  ;;  %v2272_v58 = vld [vmem:[%s3100_s3 + $0x170] ss:$8 sps:$4 sm:$0xff]  }
 0x123   : > { %v854_v41 = vmax.f32 %v685_v32, 0.0  ;;  %v852_v11 = vmax.f32 %v790_v61, 0.0  ;;  %v793_v12 = vadd.f32 %v792_v8, %v2756_v23  ;;  %v794_v13 = vpop.f32.mrb[7].mxu1 }
 0x124   : > { %v895_v45 = vpack.c.bf16 %v853_v37, %v850_v36 }
 0x125   : > { %v896_v46 = vpack.c.bf16 %v854_v41, %v851_v40  ;;  %1332 = vmatpush1.bf16.msra.mxu0 %v2254_v33  ;;  %v688_v47 = vpop.f32.mrb[8].mxu0  ;;  %v855_v18 = vmax.f32 %v793_v12, 0.0 }
 0x126   : > { %v689_v50 = vadd.f32 %v688_v47, %v2742_v4  ;;  %v690_v51 = vpop.f32.mrb[9].mxu0  ;;  %1333 = vmatprep.subr.bf16.mxu0 %v2259_v38  ;;  %v2274_v47 = vld [vmem:[%s3100_s3 + $0x174] ss:$8 sps:$4 sm:$0xff]  }
 0x127   : > { %v691_v53 = vadd.f32 %v690_v51, %v2746_v5  ;;  %v692_v54 = vpop.f32.mrb[10].mxu0  ;;  %1258 = vmatprep.mubr.bf16.mxu0 %v896_v46  ;;  %v2801_v25 = vpack.c.bf16 %v855_v18, %v852_v11  ;;  %v2277_v18 = vld [vmem:[%s3102_s5 + $0x48] sm:$0xff]  }
 0x128   : > { %v693_v56 = vadd.f32 %v692_v54, %v2742_v4  ;;  %v694_v57 = vpop.f32.mrb[11].mxu0  ;;  %1259 = vmatmul.mubr.bf16.gmra.mrb[36].mxu0 %v895_v45  ;;  %v856_v1 = vmax.f32 %v689_v50, 0.0  ;;  %v797_v28 = vpop.f32.mrb[8].mxu1 }
 0x129   : > { %v695_v59 = vadd.f32 %v694_v57, %v2746_v5  ;;  %1334 = vmatpush1.bf16.msra.mxu0 %v2257_v48  ;;  %v857_v9 = vmax.f32 %v691_v53, 0.0  ;;  %v798_v31 = vadd.f32 %v797_v28, %v2756_v23  ;;  %v799_v32 = vpop.f32.mrb[9].mxu1 }
 0x12a   : > { %v859_v6 = vmax.f32 %v693_v56, 0.0  ;;  %1335 = vmatprep.subr.bf16.mxu0 %v2262_v52  ;;  %v800_v36 = vpop.f32.mrb[10].mxu1  ;;  %v2278_v32 = vld [vmem:[%s3102_s5 + $0x8] sm:$0xff]  }
 0x12b   : > { %v860_v10 = vmax.f32 %v695_v59, 0.0  ;;  %v858_v39 = vmax.f32 %v798_v31, 0.0  ;;  %v801_v40 = vadd.f32 %v800_v36, %v2756_v23  ;;  %v802_v41 = vpop.f32.mrb[11].mxu1 }
 0x12c   : > { %v898_v14 = vpack.c.bf16 %v859_v6, %v856_v1 }
 0x12d   : > { %v899_v15 = vpack.c.bf16 %v860_v10, %v857_v9  ;;  %1336 = vmatpush1.bf16.msra.mxu0 %v2260_v60  ;;  %v698_v16 = vpop.f32.mrb[12].mxu0  ;;  %v861_v45 = vmax.f32 %v801_v40, 0.0 }
 0x12e   : > { %v699_v19 = vadd.f32 %v698_v16, %v2742_v4  ;;  %v700_v20 = vpop.f32.mrb[13].mxu0  ;;  %1337 = vmatprep.subr.bf16.mxu0 %v2265_v7 }
 0x12f   : > { %v701_v22 = vadd.f32 %v700_v20, %v2746_v5  ;;  %v702_v24 = vpop.f32.mrb[14].mxu0  ;;  %1268 = vmatprep.mubr.bf16.mxu0 %v899_v15  ;;  %v2820_v50 = vpack.c.bf16 %v861_v45, %v858_v39  ;;  %v2276_v15 = vld [vmem:[%s3102_s5] sm:$0xff]  }
 0x130   : > { %v703_v26 = vadd.f32 %v702_v24, %v2742_v4  ;;  %v704_v27 = vpop.f32.mrb[15].mxu0  ;;  %1269 = vmatmul.mubr.bf16.gmra.mrb[40].mxu0 %v898_v14  ;;  %v862_v33 = vmax.f32 %v699_v19, 0.0  ;;  %v805_v54 = vpop.f32.mrb[12].mxu1 }
 0x131   : > { %v705_v29 = vadd.f32 %v704_v27, %v2746_v5  ;;  %1338 = vmatpush1.bf16.msra.mxu0 %v2263_v17  ;;  %v863_v37 = vmax.f32 %v701_v22, 0.0  ;;  %v806_v59 = vadd.f32 %v805_v54, %v2756_v23  ;;  %v807_v61 = vpop.f32.mrb[13].mxu1 }
 0x132   : > { %v865_v34 = vmax.f32 %v703_v26, 0.0  ;;  %1339 = vmatprep.subr.bf16.mxu0 %v2268_v21  ;;  %v808_v6 = vpop.f32.mrb[14].mxu1 }
 0x133   : > { %v866_v38 = vmax.f32 %v705_v29, 0.0  ;;  %v864_v7 = vmax.f32 %v806_v59, 0.0  ;;  %v809_v8 = vadd.f32 %v808_v6, %v2756_v23  ;;  %v810_v10 = vpop.f32.mrb[15].mxu1 }
 0x134   : > { %v901_v42 = vpack.c.bf16 %v865_v34, %v862_v33  ;;  %v2279_v34 = vld [vmem:[%s3102_s5 + $0x50] sm:$0xff]  }
 0x135   : > { %v902_v43 = vpack.c.bf16 %v866_v38, %v863_v37  ;;  %1340 = vmatpush1.bf16.msra.mxu0 %v2266_v30  ;;  %v708_v46 = vpop.f32.mrb[16].mxu0  ;;  %v867_v12 = vmax.f32 %v809_v8, 0.0 }
 0x136   : > { %1341 = vmatprep.subr.bf16.mxu0 %v2271_v35  ;;  %v709_v48 = vadd.f32 %v708_v46, %v2742_v4  ;;  %v710_v49 = vpop.f32.mrb[17].mxu0  ;;  %v2281_v46 = vld [vmem:[%s3102_s5 + $0x58] sm:$0xff]  }
 0x137   : > { %1278 = vmatprep.mubr.bf16.mxu0 %v902_v43  ;;  %v711_v51 = vadd.f32 %v710_v49, %v2746_v5  ;;  %v712_v52 = vpop.f32.mrb[18].mxu0  ;;  %v2838_v19 = vpack.c.bf16 %v867_v12, %v864_v7  ;;  %v2280_v43 = vld [vmem:[%s3102_s5 + $0x10] sm:$0xff]  }
 0x138   : > { %1279 = vmatmul.mubr.bf16.gmra.mrb[44].mxu0 %v901_v42  ;;  %v868_v53 = vmax.f32 %v709_v48, 0.0  ;;  %v713_v56 = vadd.f32 %v712_v52, %v2742_v4  ;;  %v714_v57 = vpop.f32.mrb[19].mxu0  ;;  %v813_v24 = vpop.f32.mrb[16].mxu1 }
 0x139   : > { %1342 = vmatpush1.bf16.msra.mxu0 %v2269_v44  ;;  %1361 = vmatprep.mubr.bf16.mxu0 %v2355_v2  ;;  %v869_v60 = vmax.f32 %v711_v51, 0.0  ;;  %v715_v62 = vadd.f32 %v714_v57, %v2746_v5  ;;  %v814_v28 = vadd.f32 %v813_v24, %v2756_v23  ;;  %v815_v30 = vpop.f32.mrb[17].mxu1 }
 0x13a   : > { %1343 = vmatprep.subr.bf16.mxu0 %v2274_v47  ;;  %v871_v1 = vmax.f32 %v713_v56, 0.0  ;;  %v816_v33 = vpop.f32.mrb[18].mxu1 }
 0x13b   : > { %v872_v9 = vmax.f32 %v715_v62, 0.0  ;;  %v870_v35 = vmax.f32 %v814_v28, 0.0  ;;  %v817_v36 = vadd.f32 %v816_v33, %v2756_v23  ;;  %v818_v38 = vpop.f32.mrb[19].mxu1  ;;  %v2283_v62 = vld [vmem:[%s3102_s5 + $0x60] sm:$0xff]  }
 0x13c   : > { %v904_v11 = vpack.c.bf16 %v871_v1, %v868_v53 }
 0x13d   : > { %1344 = vmatpush1.bf16.msra.mxu0 %v2272_v58  ;;  %v905_v13 = vpack.c.bf16 %v872_v9, %v869_v60  ;;  %v718_v14 = vpop.f32.mrb[20].mxu0  ;;  %v873_v40 = vmax.f32 %v817_v36, 0.0  ;;  %v2282_v60 = vld [vmem:[%s3102_s5 + $0x18] sm:$0xff]  }
 0x13e   : > { %v719_v16 = vadd.f32 %v718_v14, %v2742_v4  ;;  %v720_v17 = vpop.f32.mrb[21].mxu0 }
 0x13f   : > { %v721_v20 = vadd.f32 %v720_v17, %v2746_v5  ;;  %v722_v21 = vpop.f32.mrb[22].mxu0  ;;  %1288 = vmatprep.mubr.bf16.mxu1 %v905_v13  ;;  %v2860_v47 = vpack.c.bf16 %v873_v40, %v870_v35  ;;  %v2284_v13 = vld [vmem:[%s3102_s5 + $0x20] sm:$0xff]  }
 0x140   : > { %1362 = vmatmul.mubr.bf16.vlgmr.msra.gmra.mrb[32].mxu0 %v2781_v55  ;;  %v874_v22 = vmax.f32 %v719_v16, 0.0  ;;  %v723_v26 = vadd.f32 %v722_v21, %v2742_v4  ;;  %v724_v27 = vpop.f32.mrb[23].mxu0  ;;  %1289 = vmatmul.mubr.bf16.vlgmr.msra.gmra.mrb[32].mxu1 %v904_v11  ;;  %v821_v52 = vpop.f32.mrb[20].mxu1  ;;  %v2285_v16 = vld [vmem:[%s3102_s5 + $0x68] sm:$0xff]  }
 0x141   : > { %1371 = vmatprep.mubr.bf16.mxu0 %v2355_v2  ;;  %v875_v29 = vmax.f32 %v721_v20, 0.0  ;;  %v725_v31 = vadd.f32 %v724_v27, %v2746_v5  ;;  %1951 = vmatpush3.bf16.msra.mxu1 %v2276_v15  ;;  %v822_v56 = vadd.f32 %v821_v52, %v2756_v23  ;;  %v823_v58 = vpop.f32.mrb[21].mxu1 }
 0x142   : > { %v877_v55 = vmax.f32 %v723_v26, 0.0  ;;  %1952 = vmatprep.subr.bf16.mxu1 %v2277_v18  ;;  %v824_v61 = vpop.f32.mrb[22].mxu1 }
 0x143   : > { %v878_v37 = vmax.f32 %v725_v31, 0.0  ;;  %v876_v1 = vmax.f32 %v822_v56, 0.0  ;;  %v825_v6 = vadd.f32 %v824_v61, %v2756_v23  ;;  %v826_v8 = vpop.f32.mrb[23].mxu1  ;;  %v2286_v31 = vld [vmem:[%s3102_s5 + $0x28] sm:$0xff]  }
 0x144   : > { %v907_v39 = vpack.c.bf16 %v877_v55, %v874_v22 }
 0x145   : > { %v908_v41 = vpack.c.bf16 %v878_v37, %v875_v29  ;;  %v728_v42 = vpop.f32.mrb[24].mxu0  ;;  %1953 = vmatpush3.bf16.msra.mxu1 %v2278_v32  ;;  %v879_v10 = vmax.f32 %v825_v6, 0.0 }
 0x146   : > { %v729_v44 = vadd.f32 %v728_v42, %v2742_v4  ;;  %v730_v45 = vpop.f32.mrb[25].mxu0  ;;  %1954 = vmatprep.subr.bf16.mxu1 %v2279_v34 }
 0x147   : > { %v731_v48 = vadd.f32 %v730_v45, %v2746_v5  ;;  %v732_v49 = vpop.f32.mrb[26].mxu0  ;;  %1298 = vmatprep.mubr.bf16.mxu1 %v908_v41  ;;  %v909_v17 = vpack.c.bf16 %v879_v10, %v876_v1 }
 0x148   : > { %1372 = vmatmul.mubr.bf16.gmra.mrb[36].mxu0 %v2801_v25  ;;  %v880_v51 = vmax.f32 %v729_v44, 0.0  ;;  %v733_v53 = vadd.f32 %v732_v49, %v2742_v4  ;;  %v734_v54 = vpop.f32.mrb[27].mxu0  ;;  %1299 = vmatmul.mubr.bf16.gmra.mrb[36].mxu1 %v907_v39  ;;  %v829_v22 = vpop.f32.mrb[24].mxu1 }
 0x149   : > { %1381 = vmatprep.mubr.bf16.mxu0 %v2355_v2  ;;  %v881_v57 = vmax.f32 %v731_v48, 0.0  ;;  %v735_v59 = vadd.f32 %v734_v54, %v2746_v5  ;;  %1955 = vmatpush3.bf16.msra.mxu1 %v2280_v43  ;;  %v830_v27 = vadd.f32 %v829_v22, %v2756_v23  ;;  %v831_v29 = vpop.f32.mrb[25].mxu1  ;;  %v2290_v48 = vld [vmem:[%s3102_s5 + $0x38] sm:$0xff]  }
 0x14a   : > { %v883_v25 = vmax.f32 %v733_v53, 0.0  ;;  %1956 = vmatprep.subr.bf16.mxu1 %v2281_v46  ;;  %v832_v32 = vpop.f32.mrb[26].mxu1 }
 0x14b   : > { %v884_v7 = vmax.f32 %v735_v59, 0.0  ;;  %v882_v55 = vmax.f32 %v830_v27, 0.0  ;;  %v834_v34 = vpop.f32.mrb[27].mxu1 }
 0x14c   : > { %v910_v9 = vpack.c.bf16 %v883_v25, %v880_v51 }
 0x14d   : > { %v911_v11 = vpack.c.bf16 %v884_v7, %v881_v57  ;;  %v738_v12 = vpop.f32.mrb[28].mxu0  ;;  %1957 = vmatpush3.bf16.msra.mxu1 %v2282_v60 }
 0x14e   : > { %v739_v14 = vadd.f32 %v738_v12, %v2742_v4  ;;  %v740_v15 = vpop.f32.mrb[29].mxu0  ;;  %1958 = vmatprep.subr.bf16.mxu1 %v2283_v62 }
 0x14f   : > { %v741_v18 = vadd.f32 %v740_v15, %v2746_v5  ;;  %v742_v20 = vpop.f32.mrb[30].mxu0  ;;  %1308 = vmatprep.mubr.bf16.mxu1 %v911_v11 }
 0x150   : > { %1382 = vmatmul.mubr.bf16.gmra.mrb[40].mxu0 %v2820_v50  ;;  %v886_v21 = vmax.f32 %v739_v14, 0.0  ;;  %v743_v24 = vadd.f32 %v742_v20, %v2742_v4  ;;  %v744_v26 = vpop.f32.mrb[31].mxu0  ;;  %1309 = vmatmul.mubr.bf16.gmra.mrb[40].mxu1 %v910_v9  ;;  %v833_v4 = vadd.f32 %v832_v32, %v2756_v23 }
 0x151   : > { %1391 = vmatprep.mubr.bf16.mxu0 %v2355_v2  ;;  %v887_v28 = vmax.f32 %v741_v18, 0.0  ;;  %v745_v30 = vadd.f32 %v744_v26, %v2746_v5  ;;  %1959 = vmatpush3.bf16.msra.mxu1 %v2284_v13  ;;  %v837_v5 = vpop.f32.mrb[28].mxu1 }
 0x152   : > { %v889_v50 = vmax.f32 %v743_v24, 0.0  ;;  %1960 = vmatprep.subr.bf16.mxu1 %v2285_v16  ;;  %v885_v36 = vmax.f32 %v833_v4, 0.0  ;;  %v838_v39 = vadd.f32 %v837_v5, %v2756_v23  ;;  %v839_v40 = vpop.f32.mrb[29].mxu1 }
 0x153   : > { %v890_v33 = vmax.f32 %v745_v30, 0.0  ;;  %v840_v41 = vpop.f32.mrb[30].mxu1 }
 0x154   : > { %v913_v35 = vpack.c.bf16 %v889_v50, %v886_v21  ;;  %v912_v38 = vpack.c.bf16 %v885_v36, %v882_v55  ;;  %v888_v42 = vmax.f32 %v838_v39, 0.0  ;;  %v841_v43 = vadd.f32 %v840_v41, %v2756_v23  ;;  %v842_v44 = vpop.f32.mrb[31].mxu1  ;;  %v2288_v23 = vld [vmem:[%s3102_s5 + $0x30] sm:$0xff]  }
 0x155   : > { %v914_v37 = vpack.c.bf16 %v890_v33, %v887_v28  ;;  %1961 = vmatpush3.bf16.msra.mxu1 %v2286_v31 }
 0x156   : > { %v891_v45 = vmax.f32 %v841_v43, 0.0 }
 0x157   : > { %1318 = vmatprep.mubr.bf16.mxu1 %v914_v37 }
 0x158   : > { %1392 = vmatmul.mubr.bf16.gmra.mrb[44].mxu0 %v2838_v19  ;;  %1319 = vmatmul.mubr.bf16.gmra.mrb[44].mxu1 %v913_v35  ;;  %v915_v46 = vpack.c.bf16 %v891_v45, %v888_v42  ;;  %v2287_v19 = vld [vmem:[%s3102_s5 + $0x70] sm:$0xff]  }
 0x159   : > { %1401 = vmatprep.mubr.bf16.mxu0 %v2355_v2  ;;  %1962 = vmatprep.subr.bf16.mxu1 %v2287_v19 }
 0x15a   : > { %1963 = vmatpush3.bf16.msra.mxu1 %v2288_v23 }
 0x160   : > { %1402 = vmatmul.mubr.bf16.gmra.mrb[48].mxu0 %v2860_v47  ;;  %v2289_v47 = vld [vmem:[%s3102_s5 + $0x78] sm:$0xff]  }
 0x161   : > { %1411 = vmatprep.mubr.bf16.mxu0 %v2355_v2  ;;  %1964 = vmatprep.subr.bf16.mxu1 %v2289_v47 }
 0x162   : > { %1965 = vmatpush3.bf16.msra.mxu1 %v2290_v48 }
 0x168   : > { %1412 = vmatmul.mubr.bf16.gmra.mrb[52].mxu0 %v909_v17 }
 0x169   : > { %1421 = vmatprep.mubr.bf16.mxu0 %v2355_v2 }
 0x170   : > { %1422 = vmatmul.mubr.bf16.gmra.mrb[56].mxu0 %v912_v38 }
 0x171   : > { %1431 = vmatprep.mubr.bf16.mxu0 %v2355_v2  ;;  %v964_v2 = vld [vmem:[%s3101_s4] sm:$0x3] }
 0x172   : > { %v2917_v49 = vrot.slane %v964_v2, %v386_v0  ;;  %v2921_v51 = vrot.slane %v964_v2, %v390_v3 }
 0x178   : > { %1432 = vmatmul.mubr.bf16.gmra.mrb[60].mxu0 %v915_v46 }
 0x213   : > { %v1363_v52 = vpop.f32.mrb[32].mxu0  ;;  %v2923_v53 = vpop.f32.mrb[32].mxu1 }
 0x214   : > { %v2046_v54 = vadd.f32 %v1363_v52, %v2917_v49  ;;  %v1365_v56 = vpop.f32.mrb[33].mxu0  ;;  %v2926_v57 = vpop.f32.mrb[33].mxu1 }
 0x215   : > { %v2047_v58 = vadd.f32 %v1365_v56, %v2921_v51  ;;  %v1367_v59 = vpop.f32.mrb[34].mxu0  ;;  %v2929_v60 = vpop.f32.mrb[34].mxu1 }
 0x216   : > { %v2048_v0 = vadd.f32 %v1367_v59, %v2917_v49  ;;  %v1369_v25 = vpop.f32.mrb[35].mxu0  ;;  %v2932_v61 = vpop.f32.mrb[35].mxu1  ;;  %v1442_v3 = vmax.f32 %v2046_v54, 0.0 }
 0x217   : > { %v2049_v63 = vadd.f32 %v1369_v25, %v2921_v51  ;;  %v1443_v1 = vmax.f32 %v2047_v58, 0.0 }
 0x218   : > { %v1444_v62 = vmax.f32 %v2048_v0, 0.0 }
 0x219   : > { %v1445_v6 = vmax.f32 %v2049_v63, 0.0 }
 0x21a   : > { %v1474_v7 = vpack.c.bf16 %v1444_v62, %v1442_v3  ;;  %v1291_v3 = vadd.f32 %v2923_v53, %v2917_v49 }
 0x21b   : > { %v1475_v8 = vpack.c.bf16 %v1445_v6, %v1443_v1  ;;  %v1373_v9 = vpop.f32.mrb[36].mxu0  ;;  %v2935_v10 = vpop.f32.mrb[36].mxu1  ;;  %v1293_v1 = vadd.f32 %v2926_v57, %v2921_v51 }
 0x21c   : > { %v2050_v11 = vadd.f32 %v1373_v9, %v2917_v49  ;;  %v1375_v12 = vpop.f32.mrb[37].mxu0  ;;  %v2938_v13 = vpop.f32.mrb[37].mxu1 }
 0x21d   : > { %v2051_v14 = vadd.f32 %v1375_v12, %v2921_v51  ;;  %v1377_v15 = vpop.f32.mrb[38].mxu0  ;;  %1657 = vmatprep.mubr.bf16.mxu1 %v1475_v8  ;;  %v2941_v16 = vpop.f32.mrb[38].mxu1  ;;  %v1295_v8 = vadd.f32 %v2929_v60, %v2917_v49  ;;  %v1297_v12 = vadd.f32 %v2932_v61, %v2921_v51 }
 0x21e   : > { %v2052_v17 = vadd.f32 %v1377_v15, %v2917_v49  ;;  %v1379_v18 = vpop.f32.mrb[39].mxu0  ;;  %1658 = vmatmul.mubr.bf16.vlgmr.msra.gmra.mrb[48].mxu1 %v1474_v7  ;;  %v2944_v20 = vpop.f32.mrb[39].mxu1  ;;  %v1446_v22 = vmax.f32 %v2050_v11, 0.0 }
 0x21f   : > { %v2053_v21 = vadd.f32 %v1379_v18, %v2921_v51  ;;  %v1447_v26 = vmax.f32 %v2051_v14, 0.0 }
 0x220   : > { %v1448_v24 = vmax.f32 %v2052_v17, 0.0 }
 0x221   : > { %v1449_v27 = vmax.f32 %v2053_v21, 0.0 }
 0x222   : > { %v1476_v28 = vpack.c.bf16 %v1448_v24, %v1446_v22 }
 0x223   : > { %v1477_v29 = vpack.c.bf16 %v1449_v27, %v1447_v26  ;;  %v1383_v30 = vpop.f32.mrb[40].mxu0  ;;  %v2947_v31 = vpop.f32.mrb[40].mxu1  ;;  %v1301_v26 = vadd.f32 %v2935_v10, %v2917_v49  ;;  %v1303_v27 = vadd.f32 %v2938_v13, %v2921_v51 }
 0x224   : > { %v2054_v50 = vadd.f32 %v1383_v30, %v2917_v49  ;;  %v1385_v32 = vpop.f32.mrb[41].mxu0  ;;  %v2950_v55 = vpop.f32.mrb[41].mxu1 }
 0x225   : > { %v2055_v4 = vadd.f32 %v1385_v32, %v2921_v51  ;;  %v1387_v33 = vpop.f32.mrb[42].mxu0  ;;  %1665 = vmatprep.mubr.bf16.mxu1 %v1477_v29  ;;  %v2953_v34 = vpop.f32.mrb[42].mxu1  ;;  %v1305_v29 = vadd.f32 %v2941_v16, %v2917_v49  ;;  %v1307_v32 = vadd.f32 %v2944_v20, %v2921_v51 }
 0x226   : > { %v2056_v35 = vadd.f32 %v1387_v33, %v2917_v49  ;;  %v1389_v36 = vpop.f32.mrb[43].mxu0  ;;  %1666 = vmatmul.mubr.bf16.gmra.mrb[52].mxu1 %v1476_v28  ;;  %v2956_v37 = vpop.f32.mrb[43].mxu1  ;;  %v1450_v5 = vmax.f32 %v2054_v50, 0.0 }
 0x227   : > { %v2057_v38 = vadd.f32 %v1389_v36, %v2921_v51  ;;  %v1451_v40 = vmax.f32 %v2055_v4, 0.0 }
 0x228   : > { %v1452_v39 = vmax.f32 %v2056_v35, 0.0 }
 0x229   : > { %v1453_v41 = vmax.f32 %v2057_v38, 0.0 }
 0x22a   : > { %v1478_v42 = vpack.c.bf16 %v1452_v39, %v1450_v5 }
 0x22b   : > { %v1479_v43 = vpack.c.bf16 %v1453_v41, %v1451_v40  ;;  %v1393_v44 = vpop.f32.mrb[44].mxu0  ;;  %v2959_v45 = vpop.f32.mrb[44].mxu1  ;;  %v1311_v40 = vadd.f32 %v2947_v31, %v2917_v49  ;;  %v1313_v41 = vadd.f32 %v2950_v55, %v2921_v51 }
 0x22c   : > { %v2058_v46 = vadd.f32 %v1393_v44, %v2917_v49  ;;  %v1395_v19 = vpop.f32.mrb[45].mxu0  ;;  %v2962_v23 = vpop.f32.mrb[45].mxu1 }
 0x22d   : > { %v2059_v47 = vadd.f32 %v1395_v19, %v2921_v51  ;;  %v1397_v48 = vpop.f32.mrb[46].mxu0  ;;  %1673 = vmatprep.mubr.bf16.mxu1 %v1479_v43  ;;  %v2965_v2 = vpop.f32.mrb[46].mxu1  ;;  %v1315_v43 = vadd.f32 %v2953_v34, %v2917_v49  ;;  %v1317_v19 = vadd.f32 %v2956_v37, %v2921_v51 }
 0x22e   : > { %v2060_v52 = vadd.f32 %v1397_v48, %v2917_v49  ;;  %v1399_v54 = vpop.f32.mrb[47].mxu0  ;;  %1674 = vmatmul.mubr.bf16.gmra.mrb[56].mxu1 %v1478_v42  ;;  %v2968_v56 = vpop.f32.mrb[47].mxu1  ;;  %v1454_v59 = vmax.f32 %v2058_v46, 0.0 }
 0x22f   : > { %v2061_v58 = vadd.f32 %v1399_v54, %v2921_v51  ;;  %v1455_v25 = vmax.f32 %v2059_v47, 0.0 }
 0x230   : > { %v1456_v0 = vmax.f32 %v2060_v52, 0.0 }
 0x231   : > { %v1457_v63 = vmax.f32 %v2061_v58, 0.0 }
 0x232   : > { %v1480_v62 = vpack.c.bf16 %v1456_v0, %v1454_v59 }
 0x233   : > { %v1481_v6 = vpack.c.bf16 %v1457_v63, %v1455_v25  ;;  %v1403_v7 = vpop.f32.mrb[48].mxu0  ;;  %v1321_v25 = vadd.f32 %v2959_v45, %v2917_v49  ;;  %v1323_v63 = vadd.f32 %v2962_v23, %v2921_v51 }
 0x234   : > { %v1404_v9 = vadd.f32 %v1403_v7, %v1291_v3  ;;  %v1405_v11 = vpop.f32.mrb[49].mxu0  ;;  %v1327_v7 = vadd.f32 %v2968_v56, %v2921_v51  ;;  %v3009_v51 = vld [vmem:[%s3103_s6] ss:$0 sm:$0xff] }
 0x235   : > { %v1406_v14 = vadd.f32 %v1405_v11, %v1293_v1  ;;  %v1407_v15 = vpop.f32.mrb[50].mxu0  ;;  %1681 = vmatprep.mubr.bf16.mxu1 %v1481_v6 }
 0x236   : > { %v1408_v17 = vadd.f32 %v1407_v15, %v1295_v8  ;;  %v1409_v18 = vpop.f32.mrb[51].mxu0  ;;  %1682 = vmatmul.mubr.bf16.gmra.mrb[60].mxu1 %v1480_v62  ;;  %v1458_v21 = vmax.f32 %v1404_v9, 0.0  ;;  %v1325_v62 = vadd.f32 %v2965_v2, %v2917_v49 }
 0x237   : > { %v1410_v53 = vadd.f32 %v1409_v18, %v1297_v12  ;;  %v1459_v57 = vmax.f32 %v1406_v14, 0.0 }
 0x238   : > { %v1460_v22 = vmax.f32 %v1408_v17, 0.0 }
 0x239   : > { %v1461_v24 = vmax.f32 %v1410_v53, 0.0 }
 0x23a   : > { %v1482_v60 = vpack.c.bf16 %v1460_v22, %v1458_v21 }
 0x23b   : > { %v1483_v28 = vpack.c.bf16 %v1461_v24, %v1459_v57  ;;  %v1413_v61 = vpop.f32.mrb[52].mxu0 }
 0x23c   : > { %v1414_v30 = vadd.f32 %v1413_v61, %v1301_v26  ;;  %v1415_v50 = vpop.f32.mrb[53].mxu0 }
 0x23d   : > { %v1416_v4 = vadd.f32 %v1415_v50, %v1303_v27  ;;  %v1417_v33 = vpop.f32.mrb[54].mxu0  ;;  %1689 = vmatprep.mubr.bf16.mxu1 %v1483_v28 }
 0x23e   : > { %v1418_v35 = vadd.f32 %v1417_v33, %v1305_v29  ;;  %v1419_v36 = vpop.f32.mrb[55].mxu0  ;;  %1690 = vmatmul.mubr.bf16.gmra.mrb[64].mxu1 %v1482_v60  ;;  %v1462_v38 = vmax.f32 %v1414_v30, 0.0 }
 0x23f   : > { %v1420_v10 = vadd.f32 %v1419_v36, %v1307_v32  ;;  %v1463_v13 = vmax.f32 %v1416_v4, 0.0 }
 0x240   : > { %v1464_v5 = vmax.f32 %v1418_v35, 0.0 }
 0x241   : > { %v1465_v39 = vmax.f32 %v1420_v10, 0.0 }
 0x242   : > { %v1484_v16 = vpack.c.bf16 %v1464_v5, %v1462_v38 }
 0x243   : > { %v1485_v42 = vpack.c.bf16 %v1465_v39, %v1463_v13  ;;  %v1423_v20 = vpop.f32.mrb[56].mxu0 }
 0x244   : > { %v1424_v44 = vadd.f32 %v1423_v20, %v1311_v40  ;;  %v1425_v46 = vpop.f32.mrb[57].mxu0 }
 0x245   : > { %v1426_v47 = vadd.f32 %v1425_v46, %v1313_v41  ;;  %v1427_v48 = vpop.f32.mrb[58].mxu0  ;;  %1697 = vmatprep.mubr.bf16.mxu1 %v1485_v42 }
 0x246   : > { %v1428_v52 = vadd.f32 %v1427_v48, %v1315_v43  ;;  %v1429_v54 = vpop.f32.mrb[59].mxu0  ;;  %1698 = vmatmul.mubr.bf16.gmra.mrb[68].mxu1 %v1484_v16  ;;  %v1466_v58 = vmax.f32 %v1424_v44, 0.0 }
 0x247   : > { %v1430_v31 = vadd.f32 %v1429_v54, %v1317_v19  ;;  %v1467_v55 = vmax.f32 %v1426_v47, 0.0 }
 0x248   : > { %v1468_v59 = vmax.f32 %v1428_v52, 0.0 }
 0x249   : > { %v1469_v0 = vmax.f32 %v1430_v31, 0.0 }
 0x24a   : > { %v1486_v34 = vpack.c.bf16 %v1468_v59, %v1466_v58 }
 0x24b   : > { %v1487_v3 = vpack.c.bf16 %v1469_v0, %v1467_v55  ;;  %v1433_v37 = vpop.f32.mrb[60].mxu0 }
 0x24c   : > { %v1434_v1 = vadd.f32 %v1433_v37, %v1321_v25  ;;  %v1435_v6 = vpop.f32.mrb[61].mxu0 }
 0x24d   : > { %v1436_v8 = vadd.f32 %v1435_v6, %v1323_v63  ;;  %v1437_v9 = vpop.f32.mrb[62].mxu0  ;;  %1705 = vmatprep.mubr.bf16.mxu1 %v1487_v3 }
 0x24e   : > { %v1438_v45 = vadd.f32 %v1437_v9, %v1325_v62  ;;  %v1439_v11 = vpop.f32.mrb[63].mxu0  ;;  %1706 = vmatmul.mubr.bf16.gmra.mrb[72].mxu1 %v1486_v34  ;;  %v1470_v23 = vmax.f32 %v1434_v1, 0.0 }
 0x24f   : > { %v1440_v12 = vadd.f32 %v1439_v11, %v1327_v7  ;;  %v1471_v15 = vmax.f32 %v1436_v8, 0.0 }
 0x250   : > { %v1472_v14 = vmax.f32 %v1438_v45, 0.0 }
 0x251   : > { %v1473_v17 = vmax.f32 %v1440_v12, 0.0 }
 0x252   : > { %v1488_v18 = vpack.c.bf16 %v1472_v14, %v1470_v23 }
 0x253   : > { %v1489_v49 = vpack.c.bf16 %v1473_v17, %v1471_v15 }
 0x255   : > { %1713 = vmatprep.mubr.bf16.mxu1 %v1489_v49 }
 0x256   : > { %1714 = vmatmul.mubr.bf16.gmra.mrb[76].mxu1 %v1488_v18 }
 0x2f1   : > { %v1966_v2 = vpop.f32.mrb[48].mxu1 }
 0x2f2   : > { %v1967_v56 = vpop.f32.mrb[49].mxu1 }
 0x2f3   : > { %v1968_v53 = vadd.f32 %v1967_v56, %v1966_v2  ;;  %v1969_v21 = vpop.f32.mrb[50].mxu1 }
 0x2f4   : > { %v1970_v22 = vpop.f32.mrb[51].mxu1 }
 0x2f5   : > { %v1660_v57 = vadd.f32 %v1968_v53, %v3009_v51  ;;  %v1971_v24 = vadd.f32 %v1970_v22, %v1969_v21 }
 0x2f7   : > { %1722 = vst [vmem:[%s3012_s14] sm:$0xff] %v1660_v57  ;;  %v1663_v26 = vadd.f32 %v1971_v24, %v3009_v51 }
 0x2f9   : > { %1723 = vst [vmem:[%s3012_s14 + $0x8] sm:$0xff] %v1663_v26  ;;  %v1972_v60 = vpop.f32.mrb[52].mxu1 }
 0x2fa   : > { %v1973_v27 = vpop.f32.mrb[53].mxu1 }
 0x2fb   : > { %v1974_v28 = vadd.f32 %v1973_v27, %v1972_v60  ;;  %v1975_v61 = vpop.f32.mrb[54].mxu1 }
 0x2fc   : > { %v1976_v29 = vpop.f32.mrb[55].mxu1 }
 0x2fd   : > { %v1668_v30 = vadd.f32 %v1974_v28, %v3009_v51  ;;  %v1977_v50 = vadd.f32 %v1976_v29, %v1975_v61 }
 0x2ff   : > { %1724 = vst [vmem:[%s3012_s14 + $0x10] sm:$0xff] %v1668_v30  ;;  %v1671_v32 = vadd.f32 %v1977_v50, %v3009_v51 }
 0x301   : > { %1725 = vst [vmem:[%s3012_s14 + $0x18] sm:$0xff] %v1671_v32  ;;  %v1978_v4 = vpop.f32.mrb[56].mxu1 }
 0x302   : > { %v1979_v33 = vpop.f32.mrb[57].mxu1 }
 0x303   : > { %v1980_v35 = vadd.f32 %v1979_v33, %v1978_v4  ;;  %v1981_v36 = vpop.f32.mrb[58].mxu1 }
 0x304   : > { %v1982_v10 = vpop.f32.mrb[59].mxu1 }
 0x305   : > { %v1676_v38 = vadd.f32 %v1980_v35, %v3009_v51  ;;  %v1983_v5 = vadd.f32 %v1982_v10, %v1981_v36 }
 0x307   : > { %1726 = vst [vmem:[%s3012_s14 + $0x20] sm:$0xff] %v1676_v38  ;;  %v1679_v13 = vadd.f32 %v1983_v5, %v3009_v51 }
 0x309   : > { %1727 = vst [vmem:[%s3012_s14 + $0x28] sm:$0xff] %v1679_v13  ;;  %v1984_v39 = vpop.f32.mrb[60].mxu1 }
 0x30a   : > { %v1985_v40 = vpop.f32.mrb[61].mxu1 }
 0x30b   : > { %v1986_v16 = vadd.f32 %v1985_v40, %v1984_v39  ;;  %v1987_v41 = vpop.f32.mrb[62].mxu1 }
 0x30c   : > { %v1988_v42 = vpop.f32.mrb[63].mxu1 }
 0x30d   : > { %v1684_v20 = vadd.f32 %v1986_v16, %v3009_v51  ;;  %v1989_v43 = vadd.f32 %v1988_v42, %v1987_v41 }
 0x30f   : > { %1728 = vst [vmem:[%s3012_s14 + $0x30] sm:$0xff] %v1684_v20  ;;  %v1687_v44 = vadd.f32 %v1989_v43, %v3009_v51 }
 0x311   : > { %1729 = vst [vmem:[%s3012_s14 + $0x38] sm:$0xff] %v1687_v44  ;;  %v1990_v46 = vpop.f32.mrb[64].mxu1 }
 0x312   : > { %v1991_v19 = vpop.f32.mrb[65].mxu1 }
 0x313   : > { %v1992_v47 = vadd.f32 %v1991_v19, %v1990_v46  ;;  %v1993_v48 = vpop.f32.mrb[66].mxu1 }
 0x314   : > { %v1994_v52 = vpop.f32.mrb[67].mxu1 }
 0x315   : > { %v1692_v54 = vadd.f32 %v1992_v47, %v3009_v51  ;;  %v1995_v31 = vadd.f32 %v1994_v52, %v1993_v48 }
 0x317   : > { %1730 = vst [vmem:[%s3012_s14 + $0x40] sm:$0xff] %v1692_v54  ;;  %v1695_v58 = vadd.f32 %v1995_v31, %v3009_v51 }
 0x319   : > { %1731 = vst [vmem:[%s3012_s14 + $0x48] sm:$0xff] %v1695_v58  ;;  %v1996_v59 = vpop.f32.mrb[68].mxu1 }
 0x31a   : > { %v1997_v55 = vpop.f32.mrb[69].mxu1 }
 0x31b   : > { %v1998_v0 = vadd.f32 %v1997_v55, %v1996_v59  ;;  %v1999_v25 = vpop.f32.mrb[70].mxu1 }
 0x31c   : > { %v2000_v34 = vpop.f32.mrb[71].mxu1 }
 0x31d   : > { %v1700_v63 = vadd.f32 %v1998_v0, %v3009_v51  ;;  %v2001_v3 = vadd.f32 %v2000_v34, %v1999_v25 }
 0x31f   : > { %1732 = vst [vmem:[%s3012_s14 + $0x50] sm:$0xff] %v1700_v63  ;;  %v1703_v37 = vadd.f32 %v2001_v3, %v3009_v51 }
 0x321   : > { %1733 = vst [vmem:[%s3012_s14 + $0x58] sm:$0xff] %v1703_v37  ;;  %v2002_v62 = vpop.f32.mrb[72].mxu1 }
 0x322   : > { %v2003_v1 = vpop.f32.mrb[73].mxu1 }
 0x323   : > { %v2004_v6 = vadd.f32 %v2003_v1, %v2002_v62  ;;  %v2005_v7 = vpop.f32.mrb[74].mxu1 }
 0x324   : > { %v2006_v8 = vpop.f32.mrb[75].mxu1 }
 0x325   : > { %v1708_v9 = vadd.f32 %v2004_v6, %v3009_v51  ;;  %v2007_v45 = vadd.f32 %v2006_v8, %v2005_v7 }
 0x327   : > { %1734 = vst [vmem:[%s3012_s14 + $0x60] sm:$0xff] %v1708_v9  ;;  %v1711_v11 = vadd.f32 %v2007_v45, %v3009_v51 }
 0x329   : > { %1735 = vst [vmem:[%s3012_s14 + $0x68] sm:$0xff] %v1711_v11  ;;  %v2008_v12 = vpop.f32.mrb[76].mxu1 }
 0x32a   : > { %v2009_v23 = vpop.f32.mrb[77].mxu1 }
 0x32b   : > { %v2010_v14 = vadd.f32 %v2009_v23, %v2008_v12  ;;  %v2011_v15 = vpop.f32.mrb[78].mxu1 }
 0x32c   : > { %v2012_v17 = vpop.f32.mrb[79].mxu1 }
 0x32d   : > { %v1716_v18 = vadd.f32 %v2010_v14, %v3009_v51  ;;  %v2013_v49 = vadd.f32 %v2012_v17, %v2011_v15 }
 0x32f   : > { %1736 = vst [vmem:[%s3012_s14 + $0x70] sm:$0xff] %v1716_v18  ;;  %v1719_v2 = vadd.f32 %v2013_v49, %v3009_v51 }
 0x331   : > { %1737 = vst [vmem:[%s3012_s14 + $0x78] sm:$0xff] %v1719_v2 }
 0x332   : > { %2304 = shalt.err (!%p2301_p3)
}
 0x333   : > { %s2305_s29 = scalar_lea.hbm %s3047_s19, 2048  ;;  %s2309_s13 = scalar_lea.hbm %s3104_s7, 8192 }
 0x334   : > { %p2306_p4 = scmp.ne.s32.totalorder %s3047_s19, %s2305_s29  ;;  %p2310_p9 = scmp.lt.u32.totalorder %s3047_s19, %s3104_s7 }
 0x335   : > { %p2311_p10 = scmp.lt.u32.totalorder %s2309_s13, %s2305_s29  ;;  %p2313_p12 = scmp.lt.u32.totalorder %s2305_s29, %s3047_s19 }
 0x336   : > { %p2307_p7 = pnand %p2306_p4, %p2437_p5 }
 0x337   : > { %p2312_p11 = por %p2311_p10, %p2310_p9 }
 0x338   : > { %p2308_p8 = pneg %p2307_p7 }
 0x339   : > { %p2314_p13 = por %p2313_p12, %p2312_p11 }
 0x33b   : > { %p2315_p0 = pnand %p2314_p13, %p2308_p8 }
 0x33d   : > { %2318 = shalt.err (!%p2315_p0)
}
 0x33e   : > { %s2357_s17 = smov 128   ;;  %s2358_s18 = smov 8  }
 0x33f   : > { %2110 = dma.vmem_to_hbm [thread:$0]  (%p2437_p5), %s3049_s16, 2048, %s3047_s19, %s3056_s28, %s2357_s17, %s2357_s17, %s2358_s18  }
 0x340 PF: > { %p2116_p1 = scmp.ge.s32.totalorder %s2353_s27, 2  ;;  %s1767_s23 = sand.u32 1, %s2341_s24  }
 0x341   : > { %s1768_s20 = scalar_lea.sflag [#allocation3], %s1767_s23 }
 0x342   : > { %p2113_p2 = pnand %p2116_p1, %p2441_p6 }
 0x344   : > { %2336 = dma.done.wait (!%p2113_p2), %s1768_s20, 2048  }
 0x345   : > { %2338 = vsyncadd (!%p2113_p2), %s1768_s20, 4294965248  ;;  %p17_p3 = scmp.ge.s32.totalorder %s2424_s30, 6   ;;  %s3107_s24 = smov %s2345_s25 }
 0x346   : > { %s3108_s25 = smov %s2349_s26  ;;  %s3109_s26 = smov %s2435_s10 }
 0x347   : > { %s3110_s27 = smov %s2424_s30  ;;  %19 = sbr.rel (!%p17_p3) target bundleno = 3 (0x3), region = 83 }
 0x34e   :  { %1773 = vsyncpa [#allocation3], 1 }
 0x34f   :  { %1775 = vsyncpa [#allocation3 + $0x1], 1 }

</bundles_post_ra>
